<compile_context>
chip_gen: v7x
topology: tpu7x:2x2x1
jax: 0.10.0
libtpu: 0.0.40
codegen_flags: <defaults>
</compile_context>

<pallas_src>
import numpy as np

import jax
import jax.numpy as jnp
from jax.experimental import pallas as pl
from jax.experimental.pallas import tpu as pltpu

_BN_EPS = 1e-5
_SQRT_2_OVER_PI = 0.7978845608028654


def _gelu(x):
    # TODO(synk): Mosaic has no guaranteed native erf lowering; nn.GELU()'s exact erf
    # form is replaced by the tanh approximation (|abs err| < ~1e-3, runs on the EUP).
    return 0.5 * x * (1.0 + jnp.tanh(_SQRT_2_OVER_PI * (x + 0.044715 * x * x * x)))


# ------------------------------------------------------------------ fused inception block
def _inception_block_kernel(x_ref, wb_ref, wg_ref, wp_ref, b_ref, o_ref, xw_ref):
    # x_ref : (Bt, Cin, L) f32          wb_ref: (Cin, Cb) bf16
    # wg_ref: (n_groups, G*Cb, Ctot) bf16 (BN scale folded)
    # wp_ref: (Cin, Ctot) bf16            (BN scale folded)
    # b_ref : (1, Ctot) f32             o_ref : (Bt, Ctot, L) f32
    # xw_ref: (Bt, L + K_pad - G, G*Cb) bf16 VMEM scratch (widened padded bottleneck out)
    bt, cin, L = x_ref.shape
    n_groups, gcb, c_tot = wg_ref.shape
    cb = wb_ref.shape[1]
    G = gcb // cb
    k_pad = n_groups * G
    left_pad = k_pad // 2                     # same convention as init_params
    L_pad = xw_ref.shape[1]

    # --- load + transpose to (Bt, L, Cin): channels on lanes, sequence on sublanes ----
    x = jnp.swapaxes(x_ref[...], 1, 2)                       # (Bt, L, Cin) f32
    x_bf = x.astype(jnp.bfloat16)

    # --- bottleneck 1x1 conv (bias=False): one (Bt*L, Cin)@(Cin, Cb) MXU matmul --------
    xb = jnp.dot(x_bf.reshape(bt * L, cin), wb_ref[...],
                 preferred_element_type=jnp.float32)
    xb_bf = xb.astype(jnp.bfloat16).reshape(bt, L, cb)

    # --- build widened zero-padded scratch: lane block j = bottleneck out shifted j rows
    # Zero only the pad bands (data writes below overwrite the interior), then write the
    # bottleneck output G times at row offsets left_pad - j into lane block j.
    top = left_pad
    bot0 = left_pad - (G - 1) + L
    xw_ref[:, 0:top, :] = jnp.zeros((bt, top, gcb), jnp.bfloat16)
    xw_ref[:, bot0:L_pad, :] = jnp.zeros((bt, L_pad - bot0, gcb), jnp.bfloat16)
    for j in range(G):
        r0 = left_pad - j
        xw_ref[:, r0:r0 + L, j * cb:(j + 1) * cb] = xb_bf

    # --- k=9/19/39 branch convs as n_groups big matmuls (K = G*Cb contraction) --------
    acc = jnp.zeros((bt * L, c_tot), jnp.float32)
    for g in range(n_groups):                 # static unroll: 5 MXU pushes (G=8)
        win = xw_ref[:, g * G:g * G + L, :]                  # (Bt, L, G*Cb) bf16
        acc = acc + jnp.dot(win.reshape(bt * L, gcb), wg_ref[g],
                            preferred_element_type=jnp.float32)

    # --- MaxPool1d(k=3, s=1, p=1) on x + 1x1 conv (pool branch lives in wp's columns) --
    # Boundary rows replicate the centre row == -inf padding (centre always in the max).
    left = jnp.concatenate([x[:, :1, :], x[:, :L - 1, :]], axis=1)
    right = jnp.concatenate([x[:, 1:, :], x[:, L - 1:, :]], axis=1)
    pooled = jnp.maximum(jnp.maximum(left, x), right).astype(jnp.bfloat16)
    acc = acc + jnp.dot(pooled.reshape(bt * L, cin), wp_ref[...],
                        preferred_element_type=jnp.float32)

    # --- BatchNorm shift (scale pre-folded into weights) + GELU, write (Ctot, L) -------
    y = _gelu(acc + b_ref[...]).reshape(bt, L, c_tot)
    o_ref[...] = jnp.swapaxes(y, 1, 2).astype(o_ref.dtype)


def _pick_block_batch(B, L, c_tot, target_bytes=1 << 20):
    """Largest divisor of B with ~target-sized output blocks, keeping >=2 grid steps."""
    per_elem = L * c_tot * 4
    want = max(1, min(B, target_bytes // per_elem))
    if B >= 2:
        want = min(want, max(1, B // 2))      # >=2 grid steps -> both v7x TCs get work
    bt = 1
    for d in range(1, int(want) + 1):
        if B % d == 0:
            bt = d
    return bt


def inception_block(x_ncl, params):
    """x_ncl: (B, Cin, L) f32 (PyTorch layout) -> (B, Ctot, L) f32."""
    B, Cin, L = x_ncl.shape
    wb, wg, wp, bias = params['wb'], params['wg'], params['wp'], params['bias']
    n_groups, gcb, c_tot = wg.shape
    cb = wb.shape[1]
    G = gcb // cb
    L_pad = L + (n_groups - 1) * G
    bt = _pick_block_batch(B, L, c_tot)
    nb = B // bt

    return pl.pallas_call(
        _inception_block_kernel,
        out_shape=jax.ShapeDtypeStruct((B, c_tot, L), jnp.float32),
        grid=(nb,),
        in_specs=[
            pl.BlockSpec((bt, Cin, L), lambda i: (i, 0, 0)),
            pl.BlockSpec((Cin, cb), lambda i: (0, 0)),
            pl.BlockSpec((n_groups, gcb, c_tot), lambda i: (0, 0, 0)),
            pl.BlockSpec((Cin, c_tot), lambda i: (0, 0)),
            pl.BlockSpec((1, c_tot), lambda i: (0, 0)),
        ],
        out_specs=pl.BlockSpec((bt, c_tot, L), lambda i: (i, 0, 0)),
        scratch_shapes=[pltpu.VMEM((bt, L_pad, gcb), jnp.bfloat16)],
        compiler_params=pltpu.CompilerParams(dimension_semantics=("parallel",)),
    )(x_ncl, wb, wg, wp, bias)


# -------------------------------------------------------------------------------- params
def init_params(key, in_channels, out_channels=32, bottleneck_channels=32,
                kernel_sizes=(9, 19, 39), groups=8):
    """Returns (packed kernel params, raw reference params).  groups=8 fills the
    v6e/v7x 256-deep MXU contraction; use groups=4 on v5e (128-deep MXU)."""
    n_branch = len(kernel_sizes) + 1
    c_tot = out_channels * n_branch
    kmax = max(kernel_sizes)
    k_pad = groups * int(np.ceil(kmax / groups))
    n_groups = k_pad // groups
    left_pad = k_pad // 2

    keys = jax.random.split(key, len(kernel_sizes) + 4)

    def nrm(k, shape, fan_in):
        return jax.random.normal(k, shape, dtype=jnp.float32) / np.sqrt(fan_in)

    # raw weights in PyTorch Conv1d layout (C_out, C_in, K); all convs are bias=False.
    w_bottleneck = nrm(keys[0], (bottleneck_channels, in_channels, 1), in_channels)
    w_branches = [nrm(keys[1 + i], (out_channels, bottleneck_channels, k),
                      bottleneck_channels * k)
                  for i, k in enumerate(kernel_sizes)]
    w_pool = nrm(keys[1 + len(kernel_sizes)], (out_channels, in_channels, 1), in_channels)
    gamma = 1.0 + 0.1 * jax.random.normal(keys[-2], (c_tot,), dtype=jnp.float32)
    beta = 0.1 * jax.random.normal(keys[-1], (c_tot,), dtype=jnp.float32)
    running_mean = jnp.zeros((c_tot,), jnp.float32)
    running_var = jnp.ones((c_tot,), jnp.float32)

    raw = dict(w_bottleneck=w_bottleneck, w_branches=list(w_branches), w_pool=w_pool,
               gamma=gamma, beta=beta, mean=running_mean, var=running_var)

    # ---- pack for the kernel --------------------------------------------------------
    scale = gamma / jnp.sqrt(running_var + _BN_EPS)           # eval-mode BN fold
    shift = beta - running_mean * scale
    scale_np = np.asarray(scale)

    wb = jnp.transpose(w_bottleneck[:, :, 0]).astype(jnp.bfloat16)       # (Cin, Cb)

    # branch convs combined into one (k_pad, Cb, Ctot) weight (taps zero-padded, each
    # branch in its own output-column block), BN scale folded in f32, then grouped.
    wc_full = np.zeros((k_pad, bottleneck_channels, c_tot), np.float32)
    for i, (k, w) in enumerate(zip(kernel_sizes, w_branches)):
        u0 = left_pad - (k - 1) // 2
        assert 0 <= u0 and u0 + k <= k_pad
        wc_full[u0:u0 + k, :, i * out_channels:(i + 1) * out_channels] = (
            np.transpose(np.asarray(w), (2, 1, 0)))           # (O,I,K) -> (K,I,O)
    wc_full *= scale_np[None, None, :]
    wg = jnp.asarray(
        wc_full.reshape(n_groups, groups * bottleneck_channels, c_tot),
        dtype=jnp.bfloat16)

    # pool-branch 1x1 conv in the last output-column block, BN scale folded.
    wp_full = np.zeros((in_channels, c_tot), np.float32)
    wp_full[:, (n_branch - 1) * out_channels:] = np.asarray(w_pool[:, :, 0]).T
    wp_full *= scale_np[None, :]
    wp = jnp.asarray(wp_full, dtype=jnp.bfloat16)

    packed = dict(wb=wb, wg=wg, wp=wp, bias=shift.reshape(1, c_tot))
    return packed, raw


# -------------------------------------------------------------------------------- forward
@jax.jit
def forward(params, x):
    # x: (B, Cin, L) as in PyTorch (N, C, L); returns (B, 4*out_channels, L) f32.
    return inception_block(x.astype(jnp.float32), params)


# ------------------------------------------------------------------ pure-JAX reference
def reference_forward(raw, x):
    """Eval-mode InceptionBlock1d reference in f32 (exact erf GELU)."""
    def conv1d(inp, w):
        pad = (w.shape[-1] - 1) // 2
        return jax.lax.conv_general_dilated(
            inp, w, window_strides=(1,), padding=[(pad, pad)],
            dimension_numbers=('NCH', 'OIH', 'NCH'))

    xb = conv1d(x, raw['w_bottleneck'])
    branches = [conv1d(xb, w) for w in raw['w_branches']]
    pooled = jax.lax.reduce_window(x, -jnp.inf, jax.lax.max,
                                   window_dimensions=(1, 1, 3),
                                   window_strides=(1, 1, 1),
                                   padding=[(0, 0), (0, 0), (1, 1)])
    pool_out = conv1d(pooled, raw['w_pool'])
    y = jnp.concatenate(branches + [pool_out], axis=1)
    scale = raw['gamma'] / jnp.sqrt(raw['var'] + _BN_EPS)
    shift = raw['beta'] - raw['mean'] * scale
    y = y * scale[None, :, None] + shift[None, :, None]
    return jax.nn.gelu(y, approximate=False)


if __name__ == "__main__":
    key = jax.random.PRNGKey(0)
    pkey, xkey = jax.random.split(key)

    B, Cin, L = 2, 32, 64          # L multiple of 8 for clean sublane tiles
    params, raw = init_params(pkey, in_channels=Cin)
    x = jax.random.normal(xkey, (B, Cin, L), dtype=jnp.float32)

    out = jax.block_until_ready(forward(params, x))
    assert out.shape == (B, 128, L) and out.dtype == jnp.float32
    assert bool(jnp.all(jnp.isfinite(out)))

    ref = reference_forward(raw, x)
    max_err = float(jnp.max(jnp.abs(out - ref)))
    assert max_err < 5e-2, f"max abs error vs f32 reference: {max_err}"

    print("KERNEL_OK")
</pallas_src>

<mosaic_0001>
module attributes {stable_mosaic.version = 11 : i64} {
  func.func @_inception_block_kernel(%arg0: i32, %arg1: memref<1x32x64xf32, #tpu.memory_space<vmem>>, %arg2: memref<32x32xbf16, #tpu.memory_space<vmem>>, %arg3: memref<5x256x128xbf16, #tpu.memory_space<vmem>>, %arg4: memref<32x128xbf16, #tpu.memory_space<vmem>>, %arg5: memref<1x128xf32, #tpu.memory_space<vmem>>, %arg6: memref<1x128x64xf32, #tpu.memory_space<vmem>>, %arg7: memref<1x96x256xbf16, #tpu.memory_space<vmem>>) attributes {dimension_semantics = [#tpu.dimension_semantics<parallel>], iteration_bounds = array<i64: 2>, scalar_prefetch = 0 : i64, scratch_operands = 1 : i64, tpu.core_type = #tpu.core_type<tc>, window_params = [{transform_indices = @transform_0, window_bounds = array<i64: 1, 32, 64>}, {pipeline_mode = #tpu.pipeline_mode<synchronous>, transform_indices = @transform_1, window_bounds = array<i64: 32, 32>}, {pipeline_mode = #tpu.pipeline_mode<synchronous>, transform_indices = @transform_2, window_bounds = array<i64: 5, 256, 128>}, {pipeline_mode = #tpu.pipeline_mode<synchronous>, transform_indices = @transform_3, window_bounds = array<i64: 32, 128>}, {pipeline_mode = #tpu.pipeline_mode<synchronous>, transform_indices = @transform_4, window_bounds = array<i64: 1, 128>}, {transform_indices = @transform_5, window_bounds = array<i64: 1, 128, 64>}]} {
    %c0 = arith.constant 0 : index
    %c0_0 = arith.constant 0 : index
    %c0_1 = arith.constant 0 : index
    %0 = vector.load %arg1[%c0, %c0_0, %c0_1] : memref<1x32x64xf32, #tpu.memory_space<vmem>>, vector<1x32x64xf32>
    %1 = tpu.transpose %0, [0, 2, 1] : vector<1x32x64xf32> -> vector<1x64x32xf32>
    %2 = arith.truncf %1 : vector<1x64x32xf32> to vector<1x64x32xbf16>
    %3 = vector.shape_cast %2 : vector<1x64x32xbf16> to vector<64x32xbf16>
    %c0_2 = arith.constant 0 : index
    %c0_3 = arith.constant 0 : index
    %4 = vector.load %arg2[%c0_2, %c0_3] : memref<32x32xbf16, #tpu.memory_space<vmem>>, vector<32x32xbf16>
    %cst = arith.constant dense<0.000000e+00> : vector<64x32xf32>
    %5 = tpu.matmul %3, %4, %cst {dimension_numbers = #tpu.dot_dimension_numbers<[1], [0], [0], [1], [0, 0, 1, 1], [], []>} : vector<64x32xbf16>, vector<32x32xbf16>, vector<64x32xf32> -> vector<64x32xf32>
    %6 = arith.truncf %5 : vector<64x32xf32> to vector<64x32xbf16>
    %7 = vector.shape_cast %6 : vector<64x32xbf16> to vector<1x64x32xbf16>
    %cst_4 = arith.constant 0.000000e+00 : bf16
    %8 = vector.broadcast %cst_4 : bf16 to vector<1x20x256xbf16>
    %c0_5 = arith.constant 0 : index
    %c0_6 = arith.constant 0 : index
    %c0_7 = arith.constant 0 : index
    %9 = vector.load %arg7[%c0_5, %c0_6, %c0_7] : memref<1x96x256xbf16, #tpu.memory_space<vmem>>, vector<1x20x256xbf16>
    tpu.vector_store %arg7[%c0_5, %c0_6, %c0_7], %8 {strides = array<i32>} : memref<1x96x256xbf16, #tpu.memory_space<vmem>>, vector<1x20x256xbf16>,
    %cst_8 = arith.constant 0.000000e+00 : bf16
    %10 = vector.broadcast %cst_8 : bf16 to vector<1x19x256xbf16>
    %c0_9 = arith.constant 0 : index
    %c77 = arith.constant 77 : index
    %c0_10 = arith.constant 0 : index
    %11 = vector.load %arg7[%c0_9, %c77, %c0_10] : memref<1x96x256xbf16, #tpu.memory_space<vmem>>, vector<1x19x256xbf16>
    tpu.vector_store %arg7[%c0_9, %c77, %c0_10], %10 {strides = array<i32>} : memref<1x96x256xbf16, #tpu.memory_space<vmem>>, vector<1x19x256xbf16>,
    %c0_11 = arith.constant 0 : index
    %c20 = arith.constant 20 : index
    %c0_12 = arith.constant 0 : index
    %12 = vector.load %arg7[%c0_11, %c20, %c0_12] : memref<1x96x256xbf16, #tpu.memory_space<vmem>>, vector<1x64x32xbf16>
    tpu.vector_store %arg7[%c0_11, %c20, %c0_12], %7 {strides = array<i32>} : memref<1x96x256xbf16, #tpu.memory_space<vmem>>, vector<1x64x32xbf16>,
    %c0_13 = arith.constant 0 : index
    %c19 = arith.constant 19 : index
    %c32 = arith.constant 32 : index
    %13 = vector.load %arg7[%c0_13, %c19, %c32] : memref<1x96x256xbf16, #tpu.memory_space<vmem>>, vector<1x64x32xbf16>
    tpu.vector_store %arg7[%c0_13, %c19, %c32], %7 {strides = array<i32>} : memref<1x96x256xbf16, #tpu.memory_space<vmem>>, vector<1x64x32xbf16>,
    %c0_14 = arith.constant 0 : index
    %c18 = arith.constant 18 : index
    %c64 = arith.constant 64 : index
    %14 = vector.load %arg7[%c0_14, %c18, %c64] : memref<1x96x256xbf16, #tpu.memory_space<vmem>>, vector<1x64x32xbf16>
    tpu.vector_store %arg7[%c0_14, %c18, %c64], %7 {strides = array<i32>} : memref<1x96x256xbf16, #tpu.memory_space<vmem>>, vector<1x64x32xbf16>,
    %c0_15 = arith.constant 0 : index
    %c17 = arith.constant 17 : index
    %c96 = arith.constant 96 : index
    %15 = vector.load %arg7[%c0_15, %c17, %c96] : memref<1x96x256xbf16, #tpu.memory_space<vmem>>, vector<1x64x32xbf16>
    tpu.vector_store %arg7[%c0_15, %c17, %c96], %7 {strides = array<i32>} : memref<1x96x256xbf16, #tpu.memory_space<vmem>>, vector<1x64x32xbf16>,
    %c0_16 = arith.constant 0 : index
    %c16 = arith.constant 16 : index
    %c128 = arith.constant 128 : index
    %16 = vector.load %arg7[%c0_16, %c16, %c128] : memref<1x96x256xbf16, #tpu.memory_space<vmem>>, vector<1x64x32xbf16>
    tpu.vector_store %arg7[%c0_16, %c16, %c128], %7 {strides = array<i32>} : memref<1x96x256xbf16, #tpu.memory_space<vmem>>, vector<1x64x32xbf16>,
    %c0_17 = arith.constant 0 : index
    %c15 = arith.constant 15 : index
    %c160 = arith.constant 160 : index
    %17 = vector.load %arg7[%c0_17, %c15, %c160] : memref<1x96x256xbf16, #tpu.memory_space<vmem>>, vector<1x64x32xbf16>
    tpu.vector_store %arg7[%c0_17, %c15, %c160], %7 {strides = array<i32>} : memref<1x96x256xbf16, #tpu.memory_space<vmem>>, vector<1x64x32xbf16>,
    %c0_18 = arith.constant 0 : index
    %c14 = arith.constant 14 : index
    %c192 = arith.constant 192 : index
    %18 = vector.load %arg7[%c0_18, %c14, %c192] : memref<1x96x256xbf16, #tpu.memory_space<vmem>>, vector<1x64x32xbf16>
    tpu.vector_store %arg7[%c0_18, %c14, %c192], %7 {strides = array<i32>} : memref<1x96x256xbf16, #tpu.memory_space<vmem>>, vector<1x64x32xbf16>,
    %c0_19 = arith.constant 0 : index
    %c13 = arith.constant 13 : index
    %c224 = arith.constant 224 : index
    %19 = vector.load %arg7[%c0_19, %c13, %c224] : memref<1x96x256xbf16, #tpu.memory_space<vmem>>, vector<1x64x32xbf16>
    tpu.vector_store %arg7[%c0_19, %c13, %c224], %7 {strides = array<i32>} : memref<1x96x256xbf16, #tpu.memory_space<vmem>>, vector<1x64x32xbf16>,
    %cst_20 = arith.constant 0.000000e+00 : f32
    %20 = vector.broadcast %cst_20 : f32 to vector<64x128xf32>
    %c0_21 = arith.constant 0 : index
    %c0_22 = arith.constant 0 : index
    %c0_23 = arith.constant 0 : index
    %21 = vector.load %arg7[%c0_21, %c0_22, %c0_23] : memref<1x96x256xbf16, #tpu.memory_space<vmem>>, vector<1x64x256xbf16>
    %22 = vector.shape_cast %21 : vector<1x64x256xbf16> to vector<64x256xbf16>
    %c0_24 = arith.constant 0 : index
    %c0_25 = arith.constant 0 : index
    %c0_26 = arith.constant 0 : index
    %23 = vector.load %arg3[%c0_24, %c0_25, %c0_26] : memref<5x256x128xbf16, #tpu.memory_space<vmem>>, vector<1x256x128xbf16>
    %24 = vector.shape_cast %23 : vector<1x256x128xbf16> to vector<256x128xbf16>
    %cst_27 = arith.constant dense<0.000000e+00> : vector<64x128xf32>
    %25 = tpu.matmul %22, %24, %cst_27 {dimension_numbers = #tpu.dot_dimension_numbers<[1], [0], [0], [1], [0, 0, 1, 1], [], []>} : vector<64x256xbf16>, vector<256x128xbf16>, vector<64x128xf32> -> vector<64x128xf32>
    %26 = arith.addf %20, %25 : vector<64x128xf32>
    %c0_28 = arith.constant 0 : index
    %c8 = arith.constant 8 : index
    %c0_29 = arith.constant 0 : index
    %27 = vector.load %arg7[%c0_28, %c8, %c0_29] : memref<1x96x256xbf16, #tpu.memory_space<vmem>>, vector<1x64x256xbf16>
    %28 = vector.shape_cast %27 : vector<1x64x256xbf16> to vector<64x256xbf16>
    %c1 = arith.constant 1 : index
    %c0_30 = arith.constant 0 : index
    %c0_31 = arith.constant 0 : index
    %29 = vector.load %arg3[%c1, %c0_30, %c0_31] : memref<5x256x128xbf16, #tpu.memory_space<vmem>>, vector<1x256x128xbf16>
    %30 = vector.shape_cast %29 : vector<1x256x128xbf16> to vector<256x128xbf16>
    %cst_32 = arith.constant dense<0.000000e+00> : vector<64x128xf32>
    %31 = tpu.matmul %28, %30, %cst_32 {dimension_numbers = #tpu.dot_dimension_numbers<[1], [0], [0], [1], [0, 0, 1, 1], [], []>} : vector<64x256xbf16>, vector<256x128xbf16>, vector<64x128xf32> -> vector<64x128xf32>
    %32 = arith.addf %26, %31 : vector<64x128xf32>
    %c0_33 = arith.constant 0 : index
    %c16_34 = arith.constant 16 : index
    %c0_35 = arith.constant 0 : index
    %33 = vector.load %arg7[%c0_33, %c16_34, %c0_35] : memref<1x96x256xbf16, #tpu.memory_space<vmem>>, vector<1x64x256xbf16>
    %34 = vector.shape_cast %33 : vector<1x64x256xbf16> to vector<64x256xbf16>
    %c2 = arith.constant 2 : index
    %c0_36 = arith.constant 0 : index
    %c0_37 = arith.constant 0 : index
    %35 = vector.load %arg3[%c2, %c0_36, %c0_37] : memref<5x256x128xbf16, #tpu.memory_space<vmem>>, vector<1x256x128xbf16>
    %36 = vector.shape_cast %35 : vector<1x256x128xbf16> to vector<256x128xbf16>
    %cst_38 = arith.constant dense<0.000000e+00> : vector<64x128xf32>
    %37 = tpu.matmul %34, %36, %cst_38 {dimension_numbers = #tpu.dot_dimension_numbers<[1], [0], [0], [1], [0, 0, 1, 1], [], []>} : vector<64x256xbf16>, vector<256x128xbf16>, vector<64x128xf32> -> vector<64x128xf32>
    %38 = arith.addf %32, %37 : vector<64x128xf32>
    %c0_39 = arith.constant 0 : index
    %c24 = arith.constant 24 : index
    %c0_40 = arith.constant 0 : index
    %39 = vector.load %arg7[%c0_39, %c24, %c0_40] : memref<1x96x256xbf16, #tpu.memory_space<vmem>>, vector<1x64x256xbf16>
    %40 = vector.shape_cast %39 : vector<1x64x256xbf16> to vector<64x256xbf16>
    %c3 = arith.constant 3 : index
    %c0_41 = arith.constant 0 : index
    %c0_42 = arith.constant 0 : index
    %41 = vector.load %arg3[%c3, %c0_41, %c0_42] : memref<5x256x128xbf16, #tpu.memory_space<vmem>>, vector<1x256x128xbf16>
    %42 = vector.shape_cast %41 : vector<1x256x128xbf16> to vector<256x128xbf16>
    %cst_43 = arith.constant dense<0.000000e+00> : vector<64x128xf32>
    %43 = tpu.matmul %40, %42, %cst_43 {dimension_numbers = #tpu.dot_dimension_numbers<[1], [0], [0], [1], [0, 0, 1, 1], [], []>} : vector<64x256xbf16>, vector<256x128xbf16>, vector<64x128xf32> -> vector<64x128xf32>
    %44 = arith.addf %38, %43 : vector<64x128xf32>
    %c0_44 = arith.constant 0 : index
    %c32_45 = arith.constant 32 : index
    %c0_46 = arith.constant 0 : index
    %45 = vector.load %arg7[%c0_44, %c32_45, %c0_46] : memref<1x96x256xbf16, #tpu.memory_space<vmem>>, vector<1x64x256xbf16>
    %46 = vector.shape_cast %45 : vector<1x64x256xbf16> to vector<64x256xbf16>
    %c4 = arith.constant 4 : index
    %c0_47 = arith.constant 0 : index
    %c0_48 = arith.constant 0 : index
    %47 = vector.load %arg3[%c4, %c0_47, %c0_48] : memref<5x256x128xbf16, #tpu.memory_space<vmem>>, vector<1x256x128xbf16>
    %48 = vector.shape_cast %47 : vector<1x256x128xbf16> to vector<256x128xbf16>
    %cst_49 = arith.constant dense<0.000000e+00> : vector<64x128xf32>
    %49 = tpu.matmul %46, %48, %cst_49 {dimension_numbers = #tpu.dot_dimension_numbers<[1], [0], [0], [1], [0, 0, 1, 1], [], []>} : vector<64x256xbf16>, vector<256x128xbf16>, vector<64x128xf32> -> vector<64x128xf32>
    %50 = arith.addf %44, %49 : vector<64x128xf32>
    %51 = vector.extract_strided_slice %1 {offsets = [0, 0, 0], sizes = [1, 1, 32], strides = [1, 1, 1]} : vector<1x64x32xf32> to vector<1x1x32xf32>
    %52 = vector.extract_strided_slice %1 {offsets = [0, 0, 0], sizes = [1, 63, 32], strides = [1, 1, 1]} : vector<1x64x32xf32> to vector<1x63x32xf32>
    %53 = tpu.concatenate %51, %52 in 1 : vector<1x1x32xf32>, vector<1x63x32xf32> -> vector<1x64x32xf32>
    %54 = vector.extract_strided_slice %1 {offsets = [0, 1, 0], sizes = [1, 63, 32], strides = [1, 1, 1]} : vector<1x64x32xf32> to vector<1x63x32xf32>
    %55 = vector.extract_strided_slice %1 {offsets = [0, 63, 0], sizes = [1, 1, 32], strides = [1, 1, 1]} : vector<1x64x32xf32> to vector<1x1x32xf32>
    %56 = tpu.concatenate %54, %55 in 1 : vector<1x63x32xf32>, vector<1x1x32xf32> -> vector<1x64x32xf32>
    %57 = arith.maximumf %53, %1 : vector<1x64x32xf32>
    %58 = arith.maximumf %57, %56 : vector<1x64x32xf32>
    %59 = arith.truncf %58 : vector<1x64x32xf32> to vector<1x64x32xbf16>
    %60 = vector.shape_cast %59 : vector<1x64x32xbf16> to vector<64x32xbf16>
    %c0_50 = arith.constant 0 : index
    %c0_51 = arith.constant 0 : index
    %61 = vector.load %arg4[%c0_50, %c0_51] : memref<32x128xbf16, #tpu.memory_space<vmem>>, vector<32x128xbf16>
    %cst_52 = arith.constant dense<0.000000e+00> : vector<64x128xf32>
    %62 = tpu.matmul %60, %61, %cst_52 {dimension_numbers = #tpu.dot_dimension_numbers<[1], [0], [0], [1], [0, 0, 1, 1], [], []>} : vector<64x32xbf16>, vector<32x128xbf16>, vector<64x128xf32> -> vector<64x128xf32>
    %63 = arith.addf %50, %62 : vector<64x128xf32>
    %c0_53 = arith.constant 0 : index
    %c0_54 = arith.constant 0 : index
    %64 = vector.load %arg5[%c0_53, %c0_54] : memref<1x128xf32, #tpu.memory_space<vmem>>, vector<1x128xf32>
    %65 = vector.broadcast %64 : vector<1x128xf32> to vector<64x128xf32>
    %66 = arith.addf %63, %65 : vector<64x128xf32>
    %cst_55 = arith.constant 5.000000e-01 : f32
    %67 = vector.broadcast %cst_55 : f32 to vector<64x128xf32>
    %68 = arith.mulf %67, %66 : vector<64x128xf32>
    %cst_56 = arith.constant 4.471500e-02 : f32
    %69 = vector.broadcast %cst_56 : f32 to vector<64x128xf32>
    %70 = arith.mulf %69, %66 : vector<64x128xf32>
    %71 = arith.mulf %70, %66 : vector<64x128xf32>
    %72 = arith.mulf %71, %66 : vector<64x128xf32>
    %73 = arith.addf %66, %72 : vector<64x128xf32>
    %cst_57 = arith.constant 0.797884583 : f32
    %74 = vector.broadcast %cst_57 : f32 to vector<64x128xf32>
    %75 = arith.mulf %74, %73 : vector<64x128xf32>
    %76 = math.tanh %75 : vector<64x128xf32>
    %cst_58 = arith.constant 1.000000e+00 : f32
    %77 = vector.broadcast %cst_58 : f32 to vector<64x128xf32>
    %78 = arith.addf %77, %76 : vector<64x128xf32>
    %79 = arith.mulf %68, %78 : vector<64x128xf32>
    %80 = vector.shape_cast %79 : vector<64x128xf32> to vector<1x64x128xf32>
    %81 = tpu.transpose %80, [0, 2, 1] : vector<1x64x128xf32> -> vector<1x128x64xf32>
    %c0_59 = arith.constant 0 : index
    %c0_60 = arith.constant 0 : index
    %c0_61 = arith.constant 0 : index
    %82 = vector.load %arg6[%c0_59, %c0_60, %c0_61] : memref<1x128x64xf32, #tpu.memory_space<vmem>>, vector<1x128x64xf32>
    tpu.vector_store %arg6[%c0_59, %c0_60, %c0_61], %81 {strides = array<i32>} : memref<1x128x64xf32, #tpu.memory_space<vmem>>, vector<1x128x64xf32>,
    return
  }
  func.func @transform_0(%arg0: i32) -> (i32, i32, i32) {
    %c0_i32 = arith.constant 0 : i32
    %c0_i32_0 = arith.constant 0 : i32
    %c0_i32_1 = arith.constant 0 : i32
    return %arg0, %c0_i32, %c0_i32_0 : i32, i32, i32
  }
  func.func @transform_1(%arg0: i32) -> (i32, i32) {
    %c0_i32 = arith.constant 0 : i32
    %c0_i32_0 = arith.constant 0 : i32
    %c0_i32_1 = arith.constant 0 : i32
    return %c0_i32, %c0_i32_0 : i32, i32
  }
  func.func @transform_2(%arg0: i32) -> (i32, i32, i32) {
    %c0_i32 = arith.constant 0 : i32
    %c0_i32_0 = arith.constant 0 : i32
    %c0_i32_1 = arith.constant 0 : i32
    %c0_i32_2 = arith.constant 0 : i32
    return %c0_i32, %c0_i32_0, %c0_i32_1 : i32, i32, i32
  }
  func.func @transform_3(%arg0: i32) -> (i32, i32) {
    %c0_i32 = arith.constant 0 : i32
    %c0_i32_0 = arith.constant 0 : i32
    %c0_i32_1 = arith.constant 0 : i32
    return %c0_i32, %c0_i32_0 : i32, i32
  }
  func.func @transform_4(%arg0: i32) -> (i32, i32) {
    %c0_i32 = arith.constant 0 : i32
    %c0_i32_0 = arith.constant 0 : i32
    %c0_i32_1 = arith.constant 0 : i32
    return %c0_i32, %c0_i32_0 : i32, i32
  }
  func.func @transform_5(%arg0: i32) -> (i32, i32, i32) {
    %c0_i32 = arith.constant 0 : i32
    %c0_i32_0 = arith.constant 0 : i32
    %c0_i32_1 = arith.constant 0 : i32
    return %arg0, %c0_i32, %c0_i32_0 : i32, i32, i32
  }
}

</mosaic_0001>

<bundles_post_ra>
// kernel: forward.1
= control target key start
LH: loop header
LB: loop body
LE: loop exit
PB: predicated region body
PF: predicated region fallthrough
CT: control target
= control target key end

     0   :  { %10 = vsyncpa [#allocation4], 0  ;;  %s3706_s0 = inlined_call_operand.hbm [shape: f32[2,32,64], index: 0, kind: input, shape index: {}]   ;;  %s3707_s1 = inlined_call_operand.hbm [shape: bf16[32,32], index: 1, kind: input, shape index: {}]   ;;  %s3708_s2 = inlined_call_operand.hbm [shape: bf16[5,256,128], index: 2, kind: input, shape index: {}]   ;;  %s3709_s3 = inlined_call_operand.hbm [shape: bf16[32,128], index: 3, kind: input, shape index: {}]   ;;  %s3710_s4 = inlined_call_operand.hbm [shape: f32[1,128], index: 4, kind: input, shape index: {}]   ;;  %s3711_s5 = inlined_call_operand.vmem [shape: f32[2,128,64], index: 5, kind: output, shape index: {}]  }
   0x1   :  { %12 = vsyncpa [#allocation4 + $0x1], 0 }
   0x2   :  { %13 = vsyncpa [#allocation6], 0 }
   0x3   :  { %14 = vsyncpa [#allocation9], 0  ;;  %s3019_s18 = smov 0   ;;  %s3021_s19 = smov 0  }
   0x4   :  { %s3023_s20 = smov 0   ;;  %s3025_s21 = smov 0  }
   0x5 LB: > { %s3038_s22 = sadd.s32 4294967295, %s2974_s21   ;;  %p40_p0 = scmp.ne.s32.totalorder %s2966_s19, %s2962_s18  ;;  %s2974_s21 = sphi %s3025_s21, %s3736_s21   ;;  %s2970_s20 = sphi %s3023_s20, %s3735_s20   ;;  %s2966_s19 = sphi %s3021_s19, %s3734_s19   ;;  %s2962_s18 = sphi %s3019_s18, %s3733_s18  }
   0x6   : > { %p3712_p1 = scmp.eq.s32.totalorder %s3038_s22, 0  ;;  %p2250_p2 = scmp.ge.s32.totalorder %s2974_s21, 1 }
   0x7   : > { %p161_p3 = scmp.lt.s32.totalorder %s2974_s21, 3  ;;  %s2976_s25 = smov [#allocation5]  }
   0x8   : > { %p3046_p4 = por %p3712_p1, %p40_p0  ;;  %s173_s26 = sshll.u32 %s2976_s25, 4  ;;  %s3054_s26 = int_to_ptr.vmem [resolvable:$true] %s173_s26 }
   0x9   : > { %p3050_p5 = pnand %p2250_p2, %p161_p3  ;;  %s2977_s28 = smov [#allocation8]  }
   0xa   : > { %s3717_s23 = scalar_select %p3046_p4, 1, 0 }
   0xb   : > { %s3718_s24 = scalar_select %p3050_p5, 1, 0 }
   0xc   : > { %p2618_p6 = pneg %p3050_p5  ;;  %s199_s29 = sshll.u32 %s2977_s28, 4  ;;  %s3064_s29 = int_to_ptr.vmem [resolvable:$true] %s199_s29 }
   0xd   : > { %s2978_s30 = smov [#allocation7]   ;;  %s2790_s9 = scalar_lea.hbm %s3707_s1, 256 }
   0xe   : > { %p3060_p7 = pnand %p2618_p6, %p3712_p1  ;;  %s3066_s6 = sshll.u32 %s2978_s30, 4  ;;  %s187_s6 = int_to_ptr.vmem [resolvable:$true] %s3066_s6 }
   0xf   : > { %p2791_p8 = scmp.ne.s32.totalorder %s3707_s1, %s2790_s9  ;;  %p2797_p12 = scmp.lt.u32.totalorder %s2790_s9, %s3707_s1 }
  0x10   : > { %p3076_p9 = pneg %p3060_p7 }
  0x12   : > { %p2793_p10 = pnand %p3076_p9, %p2791_p8 }
  0x14   : > { %p2794_p11 = pneg %p2793_p10 }
  0x16   : > { %p2799_p13 = pnand %p2797_p12, %p2794_p11 }
  0x18   : > { %2802 = shalt.err (!%p2799_p13)
}
  0x19   : > { %s2803_s15 = scalar_lea.vmem %s3054_s26, 256  ;;  %p2811_p6 = scmp.lt.s32.totalorder %s3054_s26, %s3054_s26 }
  0x1a   : > { %p2804_p0 = scmp.ne.s32.totalorder %s3054_s26, %s2803_s15  ;;  %p2812_p1 = scmp.lt.s32.totalorder %s2803_s15, %s2803_s15 }
  0x1c   : > { %p2806_p2 = pnand %p2804_p0, %p3076_p9  ;;  %p2813_p8 = por %p2812_p1, %p2811_p6 }
  0x1e   : > { %p2807_p3 = pneg %p2806_p2 }
  0x20   : > { %p2814_p10 = pnand %p2813_p8, %p2807_p3 }
  0x22   : > { %2817 = shalt.err (!%p2814_p10)
}
  0x23   : > { %s2979_s16 = smov 64   ;;  %s2980_s17 = smov 4  }
  0x24   : > { %2621 = dma.hbm_to_vmem [thread:$0]  (!%p3060_p7), %s3707_s1, 256, %s3054_s26, [#allocation6], %s2979_s16, %s2979_s16, %s2980_s17  }
  0x25   : > { %s2818_s7 = scalar_lea.hbm %s3709_s3, 256 }
  0x26   : > { %p2819_p1 = scmp.ne.s32.totalorder %s3709_s3, %s2818_s7  ;;  %p2825_p13 = scmp.lt.u32.totalorder %s2818_s7, %s3709_s3 }
  0x28   : > { %p2821_p11 = pnand %p2819_p1, %p3076_p9 }
  0x2a   : > { %p2822_p12 = pneg %p2821_p11 }
  0x2c   : > { %p2827_p0 = pnand %p2825_p13, %p2822_p12 }
  0x2e   : > { %2830 = shalt.err (!%p2827_p0)
}
  0x2f   : > { %s2831_s26 = scalar_lea.vmem %s3064_s29, 256  ;;  %p2839_p8 = scmp.lt.s32.totalorder %s3064_s29, %s3064_s29 }
  0x30   : > { %p2832_p2 = scmp.ne.s32.totalorder %s3064_s29, %s2831_s26  ;;  %p2840_p10 = scmp.lt.s32.totalorder %s2831_s26, %s2831_s26 }
  0x32   : > { %p2834_p3 = pnand %p2832_p2, %p3076_p9  ;;  %p2841_p1 = por %p2840_p10, %p2839_p8 }
  0x34   : > { %p2835_p6 = pneg %p2834_p3 }
  0x36   : > { %p2842_p11 = pnand %p2841_p1, %p2835_p6 }
  0x38   : > { %2845 = shalt.err (!%p2842_p11)
}
  0x39   : > { %2627 = dma.hbm_to_vmem [thread:$0]  (!%p3060_p7), %s3709_s3, 256, %s3064_s29, [#allocation9], %s2979_s16, %s2979_s16, %s2980_s17  }
  0x3a   : > { %s2846_s25 = scalar_lea.hbm %s3708_s2, 10240 }
  0x3b   : > { %p2847_p12 = scmp.ne.s32.totalorder %s3708_s2, %s2846_s25  ;;  %p2853_p2 = scmp.lt.u32.totalorder %s2846_s25, %s3708_s2 }
  0x3d   : > { %p2849_p13 = pnand %p2847_p12, %p3076_p9 }
  0x3f   : > { %p2850_p0 = pneg %p2849_p13 }
  0x41   : > { %p2855_p3 = pnand %p2853_p2, %p2850_p0 }
  0x43   : > { %2858 = shalt.err (!%p2855_p3)
}
  0x44   : > { %s2859_s9 = scalar_lea.vmem %s187_s6, 10240  ;;  %p2867_p1 = scmp.lt.s32.totalorder %s187_s6, %s187_s6 }
  0x45   : > { %p2860_p6 = scmp.ne.s32.totalorder %s187_s6, %s2859_s9  ;;  %p2868_p11 = scmp.lt.s32.totalorder %s2859_s9, %s2859_s9 }
  0x47   : > { %p2862_p8 = pnand %p2860_p6, %p3076_p9  ;;  %p2869_p4 = por %p2868_p11, %p2867_p1 }
  0x49   : > { %p2863_p10 = pneg %p2862_p8 }
  0x4b   : > { %p2870_p5 = pnand %p2869_p4, %p2863_p10 }
  0x4d   : > { %2873 = shalt.err (!%p2870_p5)
}
  0x4e   : > { %2624 = dma.hbm_to_vmem [thread:$0]  (!%p3060_p7), %s3708_s2, 10240, %s187_s6, [#allocation6], %s2979_s16, %s2979_s16, %s2980_s17  }
  0x4f   : > { %s2981_s11 = smov [#allocation10]   ;;  %s2874_s15 = scalar_lea.hbm %s3710_s4, 16 }
  0x50   : > { %s213_s26 = sshll.u32 %s2981_s11, 4  ;;  %p2875_p4 = scmp.ne.s32.totalorder %s3710_s4, %s2874_s15  ;;  %s214_s26 = int_to_ptr.vmem [resolvable:$true] %s213_s26 }
  0x51   : > { %p2881_p13 = scmp.lt.u32.totalorder %s2874_s15, %s3710_s4 }
  0x52   : > { %p2877_p5 = pnand %p2875_p4, %p3076_p9 }
  0x54   : > { %p2878_p12 = pneg %p2877_p5 }
  0x56   : > { %p2883_p0 = pnand %p2881_p13, %p2878_p12 }
  0x58   : > { %2886 = shalt.err (!%p2883_p0)
}
  0x59   : > { %s2887_s6 = scalar_lea.vmem %s214_s26, 16  ;;  %s2894_s16 = scalar_lea.vmem %s214_s26, 32 }
  0x5a   : > { %p2888_p2 = scmp.ne.s32.totalorder %s214_s26, %s2887_s6  ;;  %p2895_p8 = scmp.lt.s32.totalorder %s214_s26, %s214_s26 }
  0x5b   : > { %p2896_p10 = scmp.lt.s32.totalorder %s2894_s16, %s2887_s6 }
  0x5c   : > { %p2890_p3 = pnand %p2888_p2, %p3076_p9 }
  0x5d   : > { %p2897_p1 = por %p2896_p10, %p2895_p8 }
  0x5e   : > { %p2891_p6 = pneg %p2890_p3 }
  0x60   : > { %p2898_p11 = pnand %p2897_p1, %p2891_p6 }
  0x62   : > { %2901 = shalt.err (!%p2898_p11)
}
  0x63   : > { %2630 = dma.hbm_to_vmem [thread:$0]  (!%p3060_p7), %s3710_s4, 16, %s214_s26, [#allocation9]  }
  0x64   : > { %s3167_s12 = sadd.s32 1, %s2974_s21   ;;  %s27_s8 = sadd.s32 1, %s2970_s20 }
  0x65   : > { %s24_s9 = ssub.s32 %s2974_s21, %s3167_s12  ;;  %p34_p9 = scmp.ne.s32.totalorder %s2970_s20, %s2966_s19 }
  0x66   : > { %p25_p4 = scmp.eq.s32.totalorder %s24_s9, 0  ;;  %p35_p5 = scmp.eq.s32.totalorder %s2974_s21, 0 }
  0x67   : > { %p2639_p12 = scmp.lt.s32.totalorder %s2974_s21, 2  ;;  %s224_s27 = sand.u32 1, %s2970_s20  }
  0x68   : > { %s3178_s29 = scalar_select %p25_p4, %s2970_s20, %s27_s8  }
  0x69   : > { %p36_p13 = por %p35_p5, %p34_p9  ;;  %s2256_s10 = sshll.u32 %s224_s27, 5 }
  0x6a   : > { %s2362_s11 = sshll.u32 %s2974_s21, 9  ;;  %s228_s26 = scalar_lea.vmem [#allocation3], %s2256_s10 }
  0x6b   : > { %s3184_s15 = scalar_lea.hbm %s3706_s0, %s2362_s11  ;;  %s235_s18 = sshll.u32 %s228_s26, 4  ;;  %s3190_s18 = int_to_ptr.vmem [resolvable:$true] %s235_s18 }
  0x6c   : > { %p3186_p7 = pnand %p2639_p12, %p36_p13  ;;  %s3192_s21 = scalar_lea.sflag [#allocation4], %s224_s27 }
  0x6d   : > { %s2902_s28 = scalar_lea.hbm %s3184_s15, 512  ;;  %s2907_s16 = scalar_lea.hbm %s3706_s0, 1024 }
  0x6e   : > { %p2903_p0 = scmp.ne.s32.totalorder %s3184_s15, %s2902_s28  ;;  %p2904_p2 = pneg %p3186_p7 }
  0x6f   : > { %p2908_p8 = scmp.lt.u32.totalorder %s3184_s15, %s3706_s0  ;;  %p2909_p10 = scmp.lt.u32.totalorder %s2907_s16, %s2902_s28 }
  0x70   : > { %p2905_p3 = pnand %p2904_p2, %p2903_p0  ;;  %p2911_p11 = scmp.lt.u32.totalorder %s2902_s28, %s3184_s15 }
  0x71   : > { %p2910_p1 = por %p2909_p10, %p2908_p8 }
  0x72   : > { %p2906_p6 = pneg %p2905_p3 }
  0x73   : > { %p2912_p9 = por %p2911_p11, %p2910_p1 }
  0x75   : > { %p2913_p4 = pnand %p2912_p9, %p2906_p6 }
  0x77   : > { %2916 = shalt.err (!%p2913_p4)
}
  0x78   : > { %s2917_s8 = scalar_lea.vmem %s3190_s18, 512  ;;  %s2982_s9 = smov [#allocation3]  }
  0x79   : > { %p2918_p5 = scmp.ne.s32.totalorder %s3190_s18, %s2917_s8  ;;  %s2922_s27 = sshll.u32 %s2982_s9, 4  ;;  %s2923_s27 = int_to_ptr.vmem [resolvable:$false] %s2922_s27 }
  0x7a   : > { %s2924_s10 = scalar_lea.vmem %s2923_s27, 1024  ;;  %p2925_p0 = scmp.lt.s32.totalorder %s3190_s18, %s2923_s27 }
  0x7b   : > { %p2920_p12 = pnand %p2918_p5, %p2904_p2  ;;  %p2926_p3 = scmp.lt.s32.totalorder %s2924_s10, %s2917_s8 }
  0x7d   : > { %p2921_p13 = pneg %p2920_p12  ;;  %p2927_p8 = por %p2926_p3, %p2925_p0 }
  0x7f   : > { %p2928_p10 = pnand %p2927_p8, %p2921_p13 }
  0x81   : > { %2931 = shalt.err (!%p2928_p10)
}
  0x82   : > { %s2983_s11 = smov 128   ;;  %s2984_s13 = smov 8  }
  0x83   : > { %2634 = dma.hbm_to_vmem [thread:$0]  (!%p3186_p7), %s3184_s15, 512, %s3190_s18, %s3192_s21, %s2983_s11, %s2983_s11, %s2984_s13  }
  0x84   : > { %p3722_p2 = scmp.ne.s32.totalorder %s3718_s24, 0 }
  0x85   : > { %s249_s14 = sand.u32 (!%p3722_p2), 1, %s2966_s19   ;;  %p3723_p6 = scmp.ne.s32.totalorder (!%p3722_p2), %s3717_s23, 0 }
  0x86   : > { %247 = sbr.rel (%p3722_p2) target bundleno = 1199 (0x4af), region = 40  ;;  %s2260_s26 = sshll.u32 (!%p3722_p2), %s249_s14, 5 }
  0x87   : > { %s250_s28 = scalar_lea.sflag (!%p3722_p2), [#allocation4], %s249_s14  ;;  %s253_s30 = scalar_lea.vmem (!%p3722_p2), [#allocation3], %s2260_s26 }
  0x8d   : > { %2949 = dma.done.wait (%p3723_p6), %s250_s28, 512  }
  0x8e   : > { %2951 = vsyncadd (%p3723_p6), %s250_s28, 4294966784  ;;  %p3724_p1 = scmp.eq.s32.totalorder %s3038_s22, 0 }
  0x90   : > { %2953 = dma.done.wait (%p3724_p1), [#allocation6], 10496   ;;  %p3725_p11 = pmov %p3724_p1 }
  0x91   : > { %p3726_p7 = pmov %p3724_p1 }
  0x92   : > { %2955 = vsyncadd (%p3725_p11), [#allocation6], 4294956800 }
  0x93   : > { %2957 = dma.done.wait (%p3726_p7), [#allocation9], 272   ;;  %p3727_p9 = pmov %p3724_p1 }
  0x94   : > { %v302_v0 = vld [vmem:[%s253_s30] sm:$0xff]  ;;  %v303_v1 = vld [vmem:[%s253_s30 + $0x8] sm:$0xff]  ;;  %v304_v2 = vld [vmem:[%s253_s30 + $0x10] sm:$0xff]  ;;  %vm545_vm0 = vcmask 1040384   ;;  %vm663_vm1 = vcmask 1046528   ;;  %vm3715_vm2 = vcmask 261120  }
  0x95   : > { %2959 = vsyncadd (%p3727_p9), [#allocation9], 4294967024  ;;  %306 = vxpose.xlu0.b32.start [1/4] (short) (narrow) %v302_v0, 64  ;;  %v2689_v3 = vld [vmem:[#allocation5] sm:$0xff]   ;;  %v305_v4 = vld [vmem:[%s253_s30 + $0x18] sm:$0xff]  ;;  %vm444_vm3 = vcmask 1047558  }
  0x96   : > { %2576 = vmatprep.subr.bf16.mxu0 %v2689_v3  ;;  %v2690_v5 = vld [vmem:[#allocation5 + $0x8] sm:$0xff]   ;;  %vm445_vm4 = vsmask.f32 7962  ;;  %vm622_vm6 = vsmask.f32 7424  ;;  %vm472_vm8 = vcmask 261122  }
  0x97   : > { %2577 = vmatpush3.bf16.msra.mxu0 %v2689_v3  ;;  %vm446_vm5 = vmand %vm444_vm3, %vm445_vm4  ;;  %vm3716_vm7 = vsmask.f32 256  ;;  %vm693_vm9 = vsmask.f32 6400  ;;  %s2986_s23 = smov 64   ;;  %vm459_vm11 = vcmask 1041408  }
  0x98   : > { %2578 = vmatprep.subr.bf16.mxu0 %v2690_v5  ;;  %vm479_vm10 = vsmask.f32 1280  ;;  %s2987_s24 = smov 32   ;;  %vm477_vm12 = vcmask 254976   ;;  %s2988_s15 = smov 96   ;;  %vm649_vm13 = vcmask 523527  }
  0x99   : > { %307 = vxpose.xlu0.b32.cont [2/4] (short) (narrow) %v303_v1, 64  ;;  %vm650_vm14 = vsmask.f32 7966  ;;  %vm536_vm15 = vcmask 523520   ;;  %vm531_vm3 = vsmask.f32 7942 }
  0x9a   : > { %p296_p4 = scmp.lt.s32.totalorder %s3038_s22, 1 }
  0x9b   : > { %2579 = vmatpush3.bf16.msra.mxu0 %v2690_v5 }
  0x9c   : > { %s3738_s22 = smov (!%p296_p4, %s3038_s22), 1 }
  0x9d   : > { %308 = vxpose.xlu0.b32.cont [3/4] (short) (narrow) %v304_v2, 64  ;;  %s2363_s18 = sshll.u32 %s3738_s22, 7 }
  0x9e   : > { %s3659_s6 = scalar_lea.vmem %s3711_s5, %s2363_s18 }
  0xa1   : > { %309 = vxpose.xlu0.b32.end [4/4] (short) (narrow) %v305_v4, 64 }
 0x115   : > { %v322_v6 = vpop.trf.xlu0 }
 0x116   : > { %v1838_v7 = vrot.slane %v322_v6, 7  ;;  %v1863_v10 = vrot.slane %v322_v6, 1 }
 0x118   : > { %v1861_v8 = vsel %vm545_vm0, %v322_v6, %v1838_v7 }
 0x119   : > { %v323_v9 = vpop.trf.xlu0  ;;  %v1887_v14 = vmax.f32 %v1861_v8, %v322_v6 }
 0x11a   : > { %v1839_v11 = vrot.slane %v323_v9, 7  ;;  %v1864_v12 = vrot.slane %v323_v9, 1  ;;  %v338_v13 = vpack.c.bf16 %v323_v9, %v322_v6  ;;  %v2985_v6 = vmov 0  }
 0x11b   : > { %440 = vst [vmem:[#allocation2] sm:$0xff] %v2985_v6  ;;  %443 = vst [vmem:[#allocation2 + $0x18] sm:$0x3] %v2985_v6 }
 0x11c   : > { %v1840_v15 = vsel %vm545_vm0, %v1838_v7, %v1839_v11  ;;  %v1865_v16 = vsel %vm663_vm1, %v1863_v10, %v1864_v12  ;;  %2580 = vmatprep.mubr.msk.bf16.mxu0 %vm3715_vm2, %v338_v13  ;;  %454 = vst [vmem:[#allocation2 + $0x58] sm:$0xff] %v2985_v6  ;;  %441 = vst [vmem:[#allocation2 + $0x8] sm:$0xff] %v2985_v6  ;;  %v450_v7 = vld [vmem:[#allocation2 + $0x48] sm:$0xc0]  ;;  %v2691_v13 = vld [vmem:[#allocation7 + $0x40] sm:$0xff]  }
 0x11d   : > { %v1888_v17 = vmax.f32 %v1840_v15, %v323_v9  ;;  %v324_v18 = vpop.trf.xlu0  ;;  %v3239_v19 = vmax.f32 %v1887_v14, %v1865_v16  ;;  %442 = vst [vmem:[#allocation2 + $0x10] sm:$0x3] %v2985_v6  ;;  %453 = vst [vmem:[#allocation2 + $0x50] sm:$0xff] %v2985_v6  ;;  %v451_v8 = vsel %vm446_vm5, 0, %v450_v7  ;;  %v447_v9 = vld [vmem:[#allocation2 + $0x40] sm:$0xc0]  ;;  %2410 = vmatprep.subr.bf16.mxu0 %v2691_v13 }
 0x11e   : > { %v1841_v20 = vrot.slane %v324_v18, 7  ;;  %v1866_v21 = vrot.slane %v324_v18, 1  ;;  %452 = vst [vmem:[#allocation2 + $0x48] sm:$0xc0] %v451_v8  ;;  %v448_v10 = vsel %vm446_vm5, 0, %v447_v9  ;;  %v2692_v14 = vld [vmem:[#allocation7] sm:$0xff]  }
 0x11f   : > { %449 = vst [vmem:[#allocation2 + $0x40] sm:$0xc0] %v448_v10  ;;  %v2703_v13 = vld [vmem:[#allocation7 + $0x60] sm:$0xff]   ;;  %vm686_vm5 = vcmask 785927  }
 0x120   : > { %v1842_v22 = vsel %vm545_vm0, %v1839_v11, %v1841_v20  ;;  %v1867_v23 = vsel %vm663_vm1, %v1864_v12, %v1866_v21 }
 0x121   : > { %v1889_v24 = vmax.f32 %v1842_v22, %v324_v18  ;;  %v325_v25 = vpop.trf.xlu0  ;;  %v3243_v26 = vmax.f32 %v1888_v17, %v1867_v23 }
 0x122   : > { %v339_v27 = vpack.c.bf16 %v325_v25, %v324_v18  ;;  %v1843_v28 = vrot.slane %v325_v25, 7  ;;  %v1868_v29 = vrot.slane %v325_v25, 1 }
 0x123   : > { %v1903_v30 = vpack.c.bf16 %v3243_v26, %v3239_v19  ;;  %v2771_v19 = vld [vmem:[#allocation7 + $0x278] sm:$0xff]  }
 0x124   : > { %v1844_v31 = vsel %vm545_vm0, %v1841_v20, %v1843_v28  ;;  %v1869_v32 = vsel %vm663_vm1, %v1866_v21, %v1868_v29  ;;  %2581 = vmatmul.mubr.msk.bf16.vlgmr.msra.gmra.mrb[0].mxu0 %vm3715_vm2, %v339_v27  ;;  %v2772_v26 = vld [vmem:[#allocation7 + $0x238] sm:$0xff]  }
 0x125   : > { %v1890_v33 = vmax.f32 %v1844_v31, %v325_v25  ;;  %v3250_v34 = vmax.f32 %v1889_v24, %v1869_v32  ;;  %v326_v35 = vpop.trf.xlu0  ;;  %2411 = vmatpush3.bf16.msra.mxu0 %v2692_v14  ;;  %v2693_v24 = vld [vmem:[#allocation7 + $0x48] sm:$0xff]  }
 0x126   : > { %v1845_v36 = vrot.slane %v326_v35, 7  ;;  %v1870_v37 = vrot.slane %v326_v35, 1  ;;  %v2694_v25 = vld [vmem:[#allocation7 + $0x8] sm:$0xff]   ;;  %2412 = vmatprep.subr.bf16.mxu0 %v2693_v24 }
 0x128   : > { %v1846_v38 = vsel %vm545_vm0, %v1843_v28, %v1845_v36  ;;  %v1871_v39 = vsel %vm663_vm1, %v1868_v29, %v1870_v37 }
 0x129   : > { %v1891_v40 = vmax.f32 %v1846_v38, %v326_v35  ;;  %v3254_v41 = vmax.f32 %v1890_v33, %v1871_v39  ;;  %v327_v42 = vpop.trf.xlu0  ;;  %2413 = vmatpush3.bf16.msra.mxu0 %v2694_v25 }
 0x12a   : > { %v340_v43 = vpack.c.bf16 %v327_v42, %v326_v35  ;;  %v1847_v44 = vrot.slane %v327_v42, 7  ;;  %v1872_v45 = vrot.slane %v327_v42, 1 }
 0x12b   : > { %v1904_v46 = vpack.c.bf16 %v3254_v41, %v3250_v34 }
 0x12c   : > { %v1848_v47 = vsel %vm545_vm0, %v1845_v36, %v1847_v44  ;;  %v1873_v48 = vsel %vm663_vm1, %v1870_v37, %v1872_v45  ;;  %2584 = vmatprep.mubr.msk.bf16.mxu0 %vm3715_vm2, %v340_v43 }
 0x12d   : > { %v1892_v49 = vmax.f32 %v1848_v47, %v327_v42  ;;  %v328_v50 = vpop.trf.xlu0  ;;  %v3261_v51 = vmax.f32 %v1891_v40, %v1873_v48  ;;  %v2696_v47 = vld [vmem:[#allocation7 + $0x10] sm:$0xff]  }
 0x12e   : > { %v1849_v52 = vrot.slane %v328_v50, 7  ;;  %v1874_v53 = vrot.slane %v328_v50, 1 }
 0x130   : > { %v1850_v54 = vsel %vm545_vm0, %v1847_v44, %v1849_v52  ;;  %v1875_v55 = vsel %vm663_vm1, %v1872_v45, %v1874_v53  ;;  %v2695_v45 = vld [vmem:[#allocation7 + $0x50] sm:$0xff]  }
 0x131   : > { %v1893_v56 = vmax.f32 %v1850_v54, %v328_v50  ;;  %v329_v57 = vpop.trf.xlu0  ;;  %v3265_v58 = vmax.f32 %v1892_v49, %v1875_v55  ;;  %2414 = vmatprep.subr.bf16.mxu0 %v2695_v45 }
 0x132   : > { %v1851_v59 = vrot.slane %v329_v57, 7  ;;  %v1876_v60 = vrot.slane %v329_v57, 1  ;;  %v341_v61 = vpack.c.bf16 %v329_v57, %v328_v50  ;;  %2415 = vmatpush3.bf16.msra.mxu0 %v2696_v47 }
 0x133   : > { %v1905_v62 = vpack.c.bf16 %v3265_v58, %v3261_v51 }
 0x134   : > { %v1852_v63 = vsel %vm545_vm0, %v1849_v52, %v1851_v59  ;;  %v1886_v0 = vsel %vm663_vm1, %v1876_v60, %v329_v57  ;;  %2585 = vmatmul.mubr.msk.bf16.gmra.mrb[4].mxu0 %vm3715_vm2, %v341_v61  ;;  %v1877_v1 = vsel %vm663_vm1, %v1874_v53, %v1876_v60  ;;  %v2698_v59 = vld [vmem:[#allocation7 + $0x80] sm:$0xff]   ;;  %v2699_v60 = vld [vmem:[#allocation7 + $0x58] sm:$0xff]  }
 0x135   : > { %v1894_v2 = vmax.f32 %v1852_v63, %v329_v57  ;;  %v3273_v3 = vmax.f32 %v1893_v56, %v1877_v1  ;;  %v2697_v57 = vld [vmem:[#allocation7 + $0xc0] sm:$0xff]   ;;  %2416 = vmatprep.subr.bf16.mxu0 %v2699_v60 }
 0x136   : > { %2370 = vmatprep.subr.bf16.mxu1 %v2697_v57  ;;  %v2711_v57 = vld [vmem:[#allocation7 + $0x70] sm:$0xff]  }
 0x137   : > { %v3275_v4 = vmax.f32 %v1894_v2, %v1886_v0  ;;  %v2700_v0 = vld [vmem:[#allocation7 + $0x18] sm:$0xff]   ;;  %2371 = vmatpush3.bf16.msra.mxu1 %v2698_v59 }
 0x138   : > { %2417 = vmatpush3.bf16.msra.mxu0 %v2700_v0 }
 0x139   : > { %v1906_v5 = vpack.c.bf16 %v3275_v4, %v3273_v3  ;;  %2418 = vmatprep.subr.bf16.mxu0 %v2703_v13 }
 0x1f7   : > { %v2582_v11 = vpop.f32.mrb[0].mxu0 }
 0x1f8   : > { %v405_v12 = vpop.f32.mrb[1].mxu0 }
 0x1f9   : > { %v2583_v15 = vpop.f32.mrb[2].mxu0 }
 0x1fa   : > { %v3286_v16 = vpack.c.bf16 %v2583_v15, %v2582_v11  ;;  %v408_v17 = vpop.f32.mrb[3].mxu0  ;;  %v2701_v11 = vld [vmem:[#allocation7 + $0xc8] sm:$0xff]  }
 0x1fb   : > { %v3288_v18 = vpack.c.bf16 %v408_v17, %v405_v12  ;;  %v2702_v12 = vld [vmem:[#allocation7 + $0x88] sm:$0xff]   ;;  %v2704_v17 = vld [vmem:[#allocation7 + $0x20] sm:$0xff]   ;;  %2372 = vmatprep.subr.bf16.mxu1 %v2701_v11 }
 0x1fc   : > { %619 = vst.msk [vmem:[#allocation2 + $0x28] sm:$0xff] %vm3715_vm2, %v3286_v16  ;;  %v3293_v20 = vshll.u32 %v3286_v16, 16  ;;  %v665_v21 = vrot.slane %v3286_v16, 1  ;;  %v547_v22 = vrot.slane %v3286_v16, 7  ;;  %v3298_v23 = vshrl.u32 %v3286_v16, 16  ;;  %2373 = vmatpush3.bf16.msra.mxu1 %v2702_v12  ;;  %2419 = vmatpush3.bf16.msra.mxu0 %v2704_v17 }
 0x1fd   : > { %v460_v27 = vrot.slane %v3288_v18, 6  ;;  %v664_v28 = vrot.slane %v3288_v18, 1  ;;  %v546_v29 = vrot.slane %v3288_v18, 7  ;;  %v3304_v31 = vshrl.u32 %v3288_v18, 16  ;;  %618 = vst.msk [vmem:[#allocation2 + $0x18] sm:$0xff] %vm3715_vm2, %v3288_v18 }
 0x1fe   : > { %v3309_v32 = vshll.u32 %v3288_v18, 16  ;;  %v579_v33 = vrot.slane %v3298_v23, 7  ;;  %v697_v35 = vrot.slane %v3298_v23, 1  ;;  %v625_v48 = vrot.slane %v3293_v20, 1 }
 0x1ff   : > { %671 = vrot.lane.b32.xlu1 %v664_v28, %s2986_s23  ;;  %v483_v36 = vrot.slane %v3304_v31, 6  ;;  %v3318_v37 = vsel %vm663_vm1, %v664_v28, %v665_v21  ;;  %v694_v38 = vrot.slane %v3304_v31, 1  ;;  %v577_v39 = vrot.slane %v3304_v31, 7  ;;  %473 = vst.msk [vmem:[#allocation2 + $0x10] sm:$0xfc] %vm472_vm8, %v460_v27  ;;  %v2705_v28 = vld [vmem:[#allocation7 + $0xd0] sm:$0xff]  }
 0x200   : > { %v623_v40 = vrot.slane %v3309_v32, 1  ;;  %v486_v42 = vrot.slane %v3309_v32, 7  ;;  %v695_v43 = vrot.slane %v3309_v32, 2  ;;  %v3329_v44 = vsel %vm545_vm0, %v546_v29, %v547_v22  ;;  %2374 = vmatprep.subr.bf16.mxu1 %v2705_v28 }
 0x201   : > { %v580_v49 = vor.u32 %v579_v33, %v3293_v20  ;;  %v698_v50 = vrot.slane %v3293_v20, 2  ;;  %v491_v52 = vrot.slane %v3298_v23, 6  ;;  %v494_v56 = vrot.slane %v3293_v20, 7 }
 0x202   : > { %v624_v53 = vor.u32 %v623_v40, %v3304_v31  ;;  %v487_v54 = vor.u32 %v486_v42, %v483_v36  ;;  %v3338_v55 = vor.u32 %v695_v43, %v694_v38  ;;  %v461_v8 = vrot.slane %v3286_v16, 6  ;;  %v2708_v42 = vld [vmem:[#allocation7 + $0x28] sm:$0xff]   ;;  %v2719_v16 = vld [vmem:[#allocation7 + $0xf0] sm:$0xff]  }
 0x203   : > { %553 = vrot.lane.b32.xlu1 %v546_v29, %s2986_s23  ;;  %v3345_v61 = vsel %vm3716_vm7, %v577_v39, %v580_v49  ;;  %v3347_v63 = vor.u32 %v698_v50, %v697_v35  ;;  %v3350_v2 = vor.u32 %v494_v56, %v491_v52  ;;  %v2706_v29 = vld [vmem:[#allocation7 + $0x90] sm:$0xff]   ;;  %v2707_v35 = vld [vmem:[#allocation7 + $0x68] sm:$0xff]   ;;  %v2709_v50 = vld [vmem:[#allocation7 + $0xd8] sm:$0xff]  }
 0x204   : > { %v626_v1 = vsel %vm622_vm6, %v624_v53, %v625_v48  ;;  %v462_v14 = vsel %vm459_vm11, %v460_v27, %v461_v8  ;;  %2420 = vmatprep.subr.bf16.mxu0 %v2707_v35  ;;  %2375 = vmatpush3.bf16.msra.mxu1 %v2706_v29  ;;  %v2710_v56 = vld [vmem:[#allocation7 + $0x98] sm:$0xff]  }
 0x205   : > { %636 = vrot.lane.b32.xlu0 %v626_v1, %s2987_s24  ;;  %v3356_v7 = vsel %vm693_vm9, %v3338_v55, %v3347_v63  ;;  %v3361_v9 = vsel %vm479_vm10, %v487_v54, %v3350_v2  ;;  %474 = vst.msk [vmem:[#allocation2 + $0x20] sm:$0xff] %vm3715_vm2, %v462_v14  ;;  %2421 = vmatpush3.bf16.msra.mxu0 %v2708_v42  ;;  %v2714_v42 = vld [vmem:[#allocation7 + $0xa0] sm:$0xff]  }
 0x206   : > { %2376 = vmatprep.subr.bf16.mxu1 %v2709_v50  ;;  %2422 = vmatprep.subr.bf16.mxu0 %v2711_v57 }
 0x207   : > { %634 = vrot.lane.b32.xlu1 %v623_v40, %s2987_s24  ;;  %v2586_v10 = vpop.f32.mrb[4].mxu0  ;;  %v627_v40 = vor.u32 %v625_v48, %v3298_v23  ;;  %v578_v23 = vor.u32 %v577_v39, %v3309_v32 }
 0x208   : > { %v421_v15 = vpop.f32.mrb[5].mxu0  ;;  %2377 = vmatpush3.bf16.msra.mxu1 %v2710_v56 }
 0x209   : > { %v2587_v18 = vpop.f32.mrb[6].mxu0 }
 0x20a   : > { %v3368_v20 = vpack.c.bf16 %v2587_v18, %v2586_v10  ;;  %v424_v24 = vpop.f32.mrb[7].mxu0  ;;  %v2712_v10 = vld [vmem:[#allocation7 + $0x30] sm:$0xff]   ;;  %v2713_v18 = vld [vmem:[#allocation7 + $0xe0] sm:$0xff]  }
 0x20b   : > { %v3370_v25 = vpack.c.bf16 %v424_v24, %v421_v15  ;;  %515 = vrot.lane.b32.xlu1 %v487_v54, %s2987_s24  ;;  %v2715_v24 = vld [vmem:[#allocation7 + $0x78] sm:$0xff]   ;;  %2423 = vmatpush3.bf16.msra.mxu0 %v2712_v10 }
 0x20c   : > { %v465_v27 = vrot.slane %v3368_v20, 6  ;;  %v3375_v36 = vshrl.u32 %v3368_v20, 16  ;;  %v3378_v38 = vshll.u32 %v3368_v20, 16  ;;  %621 = vst.msk [vmem:[#allocation2 + $0x48] sm:$0xff] %vm3715_vm2, %v3368_v20  ;;  %v551_v49 = vrot.slane %v3368_v20, 7  ;;  %2378 = vmatprep.subr.bf16.mxu1 %v2713_v18  ;;  %2424 = vmatprep.subr.bf16.mxu0 %v2715_v24  ;;  %v2724_v18 = vld [vmem:[#allocation7 + $0x180] sm:$0xff]  }
 0x20d   : > { %620 = vst.msk [vmem:[#allocation2 + $0x38] sm:$0xff] %vm3715_vm2, %v3370_v25  ;;  %v549_v43 = vrot.slane %v3370_v25, 7  ;;  %v498_v45 = vshrl.u32 %v3370_v25, 16  ;;  %v501_v47 = vshll.u32 %v3370_v25, 16  ;;  %v669_v54 = vrot.slane %v3368_v20, 1  ;;  %2379 = vmatpush3.bf16.msra.mxu1 %v2714_v42 }
 0x20e   : > { %v705_v48 = vrot.slane %v3375_v36, 1  ;;  %v706_v52 = vrot.slane %v3378_v38, 2  ;;  %v585_v53 = vrot.slane %v3375_v36, 7  ;;  %478 = vst.msk [vmem:[#allocation2 + $0x50] sm:$0x3] %vm477_vm12, %v465_v27  ;;  %v667_v0 = vrot.slane %v3370_v25, 1 }
 0x20f   : > { %673 = vrot.lane.b32.xlu1 %v3318_v37, %s2986_s23  ;;  %v550_v59 = vsel %vm545_vm0, %v547_v22, %v549_v43  ;;  %v582_v60 = vrot.slane %v498_v45, 7  ;;  %v628_v1 = vrot.slane %v501_v47, 1  ;;  %v463_v11 = vrot.slane %v3370_v25, 6 }
 0x210   : > { %557 = vrot.lane.b32.xlu0 %v550_v59, %s2986_s23  ;;  %v707_v12 = vor.u32 %v706_v52, %v705_v48  ;;  %v586_v13 = vor.u32 %v585_v53, %v3378_v38  ;;  %v701_v37 = vrot.slane %v498_v45, 1  ;;  %v668_v22 = vsel %vm663_vm1, %v665_v21, %v667_v0  ;;  %v2716_v52 = vld [vmem:[#allocation7 + $0x38] sm:$0xff]  }
 0x211   : > { %v583_v14 = vor.u32 %v582_v60, %v501_v47  ;;  %v670_v15 = vsel %vm663_vm1, %v667_v0, %v669_v54  ;;  %v629_v17 = vsel %vm622_vm6, %v627_v40, %v628_v1  ;;  %v631_v28 = vrot.slane %v3378_v38, 1  ;;  %v2717_v0 = vld [vmem:[#allocation7 + $0xe8] sm:$0xff]   ;;  %2425 = vmatpush3.bf16.msra.mxu0 %v2716_v52  ;;  %v777_v52 = vld [vmem:[#allocation2] sm:$0xf0] }
 0x212   : > { %v587_v25 = vsel %vm3716_vm7, %v582_v60, %v586_v13  ;;  %v702_v29 = vrot.slane %v501_v47, 2  ;;  %v630_v35 = vor.u32 %v628_v1, %v498_v45  ;;  %v500_v40 = vrot.slane %v498_v45, 6  ;;  %2380 = vmatprep.subr.bf16.mxu1 %v2717_v0 }
 0x213   : > { %709 = vrot.lane.b32.xlu1 %v3338_v55, %s2988_s15  ;;  %v584_v21 = vsel %vm3716_vm7, %v579_v33, %v583_v14  ;;  %v503_v50 = vrot.slane %v501_v47, 7  ;;  %v509_v48 = vrot.slane %v3375_v36, 6  ;;  %v512_v59 = vrot.slane %v3378_v38, 7 }
 0x214   : > { %592 = vrot.lane.b32.xlu0 %v584_v21, %s2988_s15  ;;  %v703_v57 = vor.u32 %v702_v29, %v701_v37  ;;  %v632_v56 = vsel %vm622_vm6, %v630_v35, %v631_v28  ;;  %v552_v55 = vsel %vm545_vm0, %v549_v43, %v551_v49  ;;  %v466_v45 = vsel %vm459_vm11, %v463_v11, %v465_v27  ;;  %v2718_v43 = vld [vmem:[#allocation7 + $0xa8] sm:$0xff]   ;;  %v2729_v27 = vld [vmem:[#allocation7 + $0x140] sm:$0xff]   ;;  %vm651_vm0 = vmand %vm649_vm13, %vm650_vm14 }
 0x215   : > { %v504_v33 = vor.u32 %v503_v50, %v500_v40  ;;  %v513_v60 = vor.u32 %v512_v59, %v509_v48  ;;  %476 = vst.msk [vmem:[#allocation2 + $0x40] sm:$0xff] %vm3715_vm2, %v466_v45  ;;  %v464_v31 = vsel %vm459_vm11, %v461_v8, %v463_v11  ;;  %2381 = vmatpush3.bf16.msra.mxu1 %v2718_v43  ;;  %v2721_v8 = vld [vmem:[#allocation7 + $0xf8] sm:$0xff]   ;;  %vm530_vm1 = vcmask 523521   ;;  %v2726_v29 = vld [vmem:[#allocation7 + $0x188] sm:$0xff]   ;;  %v2727_v35 = vld [vmem:[#allocation7 + $0x1d0] sm:$0xff]  }
 0x216   : > { %v704_v47 = vsel %vm693_vm9, %v3347_v63, %v703_v57  ;;  %v708_v38 = vsel %vm693_vm9, %v703_v57, %v707_v12  ;;  %475 = vst.msk [vmem:[#allocation2 + $0x30] sm:$0xff] %vm3715_vm2, %v464_v31  ;;  %v2720_v63 = vld [vmem:[#allocation7 + $0xb0] sm:$0xff]   ;;  %2382 = vmatprep.subr.bf16.mxu1 %v2719_v16  ;;  %vm532_vm8 = vmand %vm530_vm1, %vm531_vm3  ;;  %vm568_vm11 = vcmask 785921   ;;  %vm570_vm12 = vcmask 785920   ;;  %v2731_v40 = vld [vmem:[#allocation7 + $0x1d8] sm:$0xff]  }
 0x217   : > { %588 = vrot.lane.b32.xlu1 %v578_v23, %s2988_s15  ;;  %v505_v32 = vsel %vm479_vm10, %v3350_v2, %v504_v33  ;;  %v514_v39 = vsel %vm479_vm10, %v504_v33, %v513_v60  ;;  %v2722_v2 = vld [vmem:[#allocation7 + $0xb8] sm:$0xff]   ;;  %vm724_vm2 = vcmask 1048326   ;;  %vm603_vm14 = vcmask 1048320   ;;  %v2728_v21 = vld [vmem:[#allocation7 + $0x190] sm:$0xff]   ;;  %v2736_v33 = vld [vmem:[#allocation7 + $0x1a0] sm:$0xff]  }
 0x218   : > { %717 = vrot.lane.b32.xlu0 %v707_v12, %s2988_s15  ;;  %vm725_vm13 = vmand %vm724_vm2, %vm445_vm4  ;;  %vm604_vm7 = vsmask.f32 7938  ;;  %v2732_v48 = vld [vmem:[#allocation7 + $0x198] sm:$0xff]   ;;  %v825_v23 = vrot.slane %v777_v52, 4  ;;  %vm824_vm2 = vcmask 1043456   ;;  %v2733_v43 = vld [vmem:[#allocation7 + $0x148] sm:$0xff]  }
 0x219   : > { %2383 = vmatpush3.bf16.msra.mxu1 %v2720_v63  ;;  %v2743_v16 = vld [vmem:[#allocation7 + $0x1f0] sm:$0xff]   ;;  %v2734_v63 = vld [vmem:[#allocation7 + $0x108] sm:$0xff]   ;;  %vm659_vm4 = vmand %vm536_vm15, %vm622_vm6  ;;  %vm732_vm6 = vcmask 1047296   ;;  %vm574_vm3 = vcmask 778752  }
 0x21a   : > { %2384 = vmatprep.subr.bf16.mxu1 %v2721_v8  ;;  %v2737_v8 = vld [vmem:[#allocation7 + $0x150] sm:$0xff]   ;;  %vm733_vm1 = vmand %vm732_vm6, %vm693_vm9  ;;  %v2754_v52 = vld [vmem:[#allocation7 + $0x138] sm:$0xff]   ;;  %vm540_vm9 = vcmask 517376  }
 0x21b   : > { %555 = vrot.lane.b32.xlu1 %v3329_v44, %s2986_s23  ;;  %v2723_v44 = vld [vmem:[#allocation7 + $0x1c0] sm:$0xff]  }
 0x21c   : > { %594 = vrot.lane.b32.xlu0 %v587_v25, %s2988_s15  ;;  %2490 = vmatprep.subr.bf16.mxu0 %v2723_v44  ;;  %v2725_v25 = vld [vmem:[#allocation7 + $0x1c8] sm:$0xff]   ;;  %v2744_v44 = vld [vmem:[#allocation7 + $0x1b0] sm:$0xff]  }
 0x21d   : > { %2385 = vmatpush3.bf16.msra.mxu1 %v2722_v2 }
 0x21e   : > { %2450 = vmatprep.subr.bf16.mxu1 %v2729_v27  ;;  %v2738_v27 = vld [vmem:[#allocation7 + $0x110] sm:$0xff]  }
 0x21f   : > { %590 = vrot.lane.b32.xlu1 %v3345_v61, %s2988_s15  ;;  %v633_v61 = vor.u32 %v631_v28, %v3375_v36 }
 0x220   : > { %561 = vrot.lane.b32.xlu0 %v551_v49, %s2986_s23  ;;  %v652_v49 = vld [vmem:[#allocation2 + $0x8] sm:$0x80] }
 0x223   : > { %711 = vrot.lane.b32.xlu1 %v3356_v7, %s2988_s15 }
 0x227   : > { %517 = vrot.lane.b32.xlu1 %v3361_v9, %s2987_s24 }
 0x22b   : > { %679 = vrot.lane.b32.xlu1 %v669_v54, %s2986_s23 }
 0x22f   : > { %675 = vrot.lane.b32.xlu1 %v668_v22, %s2986_s23 }
 0x233   : > { %677 = vrot.lane.b32.xlu1 %v670_v15, %s2986_s23 }
 0x237   : > { %638 = vrot.lane.b32.xlu1 %v629_v17, %s2987_s24 }
 0x23b   : > { %642 = vrot.lane.b32.xlu1 %v633_v61, %s2987_s24  ;;  %v2747_v61 = vld [vmem:[#allocation7 + $0x1f8] sm:$0xff]  }
 0x23f   : > { %713 = vrot.lane.b32.xlu1 %v704_v47, %s2988_s15 }
 0x243   : > { %640 = vrot.lane.b32.xlu1 %v632_v56, %s2987_s24 }
 0x247   : > { %519 = vrot.lane.b32.xlu1 %v505_v32, %s2987_s24 }
 0x24b   : > { %715 = vrot.lane.b32.xlu1 %v708_v38, %s2988_s15  ;;  %v2739_v38 = vld [vmem:[#allocation7 + $0x1e8] sm:$0xff]  }
 0x24f   : > { %521 = vrot.lane.b32.xlu1 %v514_v39, %s2987_s24  ;;  %v2740_v39 = vld [vmem:[#allocation7 + $0x1a8] sm:$0xff]  }
 0x253   : > { %559 = vrot.lane.b32.xlu1 %v552_v55, %s2986_s23 }
 0x257   : > { %523 = vrot.lane.b32.xlu1 %v513_v60, %s2987_s24  ;;  %v2730_v60 = vld [vmem:[#allocation7 + $0x100] sm:$0xff]  }
 0x25b   : > { %596 = vrot.lane.b32.xlu1 %v585_v53, %s2988_s15  ;;  %v533_v53 = vld [vmem:[#allocation2 + $0x10] sm:$0xfe] }
 0x271   : > { %v672_v7 = vpop.permute.xlu1 %671 }
 0x275   : > { %v554_v9 = vpop.permute.xlu1 %553 }
 0x277   : > { %v637_v20 = vpop.permute.xlu0 %636 }
 0x278   : > { %655 = vst.msk [vmem:[#allocation2 + $0x18] sm:$0xff] %vm536_vm15, %v637_v20  ;;  %v2748_v20 = vld [vmem:[#allocation7 + $0x1b8] sm:$0xff]  }
 0x279   : > { %v635_v54 = vpop.permute.xlu1 %634 }
 0x27a   : > { %v653_v1 = vsel %vm651_vm0, %v635_v54, %v652_v49  ;;  %vm605_vm0 = vmand %vm603_vm14, %vm604_vm7  ;;  %v3502_v49 = vld [vmem:[#allocation8] sm:$0xff]   ;;  %v2742_v54 = vld [vmem:[#allocation7 + $0x118] sm:$0xff]   ;;  %vm691_vm7 = vcmask 784896  }
 0x27b   : > { %654 = vst [vmem:[#allocation2 + $0x8] sm:$0x80] %v653_v1  ;;  %v2745_v1 = vld [vmem:[#allocation7 + $0x160] sm:$0xff]  }
 0x27c   : > { %687 = vst.msk [vmem:[#allocation2 + $0x8] sm:$0x80] %vm686_vm5, %v672_v7  ;;  %v2741_v7 = vld [vmem:[#allocation7 + $0x158] sm:$0xff]   ;;  %vm3728_vm5 = vsmask.f32 256 }
 0x27d   : > { %v516_v36 = vpop.permute.xlu1 %515 }
 0x27e   : > { %v534_v10 = vsel %vm532_vm8, %v516_v36, %v533_v53  ;;  %v660_v53 = vld [vmem:[#allocation2 + $0x48] sm:$0xff] }
 0x27f   : > { %535 = vst [vmem:[#allocation2 + $0x10] sm:$0xfe] %v534_v10 }
 0x280   : > { %569 = vst.msk [vmem:[#allocation2 + $0x10] sm:$0xfe] %vm568_vm11, %v554_v9  ;;  %vm3729_vm11 = vcmask 261120  }
 0x281   : > { %v674_v11 = vpop.permute.xlu1 %673 }
 0x282   : > { %688 = vst.msk [vmem:[#allocation2 + $0x18] sm:$0xff] %vm570_vm12, %v674_v11  ;;  %v558_v36 = vpop.permute.xlu0 %557 }
 0x283   : > { %v726_v12 = vld [vmem:[#allocation2 + $0x8] sm:$0xc0] }
 0x285   : > { %v710_v13 = vpop.permute.xlu1 %709 }
 0x286   : > { %v727_v37 = vsel %vm725_vm13, %v710_v13, %v726_v12  ;;  %v2746_v12 = vld [vmem:[#allocation7 + $0x120] sm:$0xff]   ;;  %v2749_v13 = vld [vmem:[#allocation7 + $0x168] sm:$0xff]   ;;  %vm3731_vm13 = vmmov %vm3729_vm11 }
 0x287   : > { %728 = vst [vmem:[#allocation2 + $0x8] sm:$0xc0] %v727_v37  ;;  %v606_v22 = vld [vmem:[#allocation2 + $0x10] sm:$0xff] }
 0x289   : > { %v589_v14 = vpop.permute.xlu1 %588 }
 0x28a   : > { %v3481_v15 = vsel %vm605_vm0, %v589_v14, %v606_v22  ;;  %v593_v14 = vpop.permute.xlu0 %592  ;;  %v2750_v22 = vld [vmem:[#allocation7 + $0x128] sm:$0xff]   ;;  %vm2127_vm0 = vcmask 523264  }
 0x28b   : > { %608 = vst [vmem:[#allocation2 + $0x10] sm:$0xff] %v3481_v15  ;;  %v826_v55 = vrot.slane %v3481_v15, 4 }
 0x28d   : > { %v556_v17 = vpop.permute.xlu1 %555  ;;  %v827_v32 = vsel %vm824_vm2, %v825_v23, %v826_v55 }
 0x28e   : > { %v738_v24 = vld [vmem:[#allocation2 + $0x8] sm:$0xff] }
 0x28f   : > { %1140 = vmatprep.mubr.bf16.mxu0 %v738_v24  ;;  %v778_v57 = vld [vmem:[#allocation2 + $0x8] sm:$0xf0] }
 0x290   : > { %1141 = vmatmul.mubr.bf16.vlgmr.msra.gmra.mrb[8].mxu0 %v2985_v6  ;;  %v2735_v6 = vld [vmem:[#allocation7 + $0x1e0] sm:$0xff]   ;;  %v828_v47 = vrot.slane %v778_v57, 4 }
 0x291   : > { %v591_v28 = vpop.permute.xlu1 %590  ;;  %2491 = vmatpush3.bf16.msra.mxu0 %v2724_v18  ;;  %v2755_v57 = vld [vmem:[#allocation7 + $0x240] sm:$0xff]  }
 0x292   : > { %2492 = vmatprep.subr.bf16.mxu0 %v2725_v25  ;;  %v718_v25 = vpop.permute.xlu0 %717 }
 0x295   : > { %v712_v42 = vpop.permute.xlu1 %711  ;;  %2493 = vmatpush3.bf16.msra.mxu0 %v2726_v29  ;;  %v2752_v29 = vld [vmem:[#allocation7 + $0x130] sm:$0xff]  }
 0x296   : > { %729 = vst.msk [vmem:[#allocation2 + $0x18] sm:$0xff] %vm603_vm14, %v712_v42  ;;  %2494 = vmatprep.subr.bf16.mxu0 %v2727_v35  ;;  %v2753_v42 = vld [vmem:[#allocation7 + $0x178] sm:$0xff]  }
 0x299   : > { %v518_v50 = vpop.permute.xlu1 %517  ;;  %2495 = vmatpush3.bf16.msra.mxu0 %v2728_v21 }
 0x29a   : > { %537 = vst.msk [vmem:[#allocation2 + $0x20] sm:$0xff] %vm536_vm15, %v518_v50  ;;  %2496 = vmatprep.subr.bf16.mxu0 %v2731_v40 }
 0x29b   : > { %571 = vst.msk [vmem:[#allocation2 + $0x20] sm:$0xff] %vm570_vm12, %v556_v17  ;;  %v2751_v17 = vld [vmem:[#allocation7 + $0x170] sm:$0xff]  }
 0x29c   : > { %610 = vst.msk [vmem:[#allocation2 + $0x20] sm:$0xff] %vm603_vm14, %v591_v28 }
 0x29d   : > { %v680_v56 = vpop.permute.xlu1 %679  ;;  %v3489_v59 = vld [vmem:[#allocation2 + $0x18] sm:$0xff]  ;;  %2497 = vmatpush3.bf16.msra.mxu0 %v2732_v48 }
 0x29e   : > { %v829_v45 = vrot.slane %v3489_v59, 4  ;;  %1148 = vmatprep.mubr.bf16.mxu0 %v3489_v59  ;;  %2498 = vmatprep.subr.bf16.mxu0 %v2735_v6 }
 0x29f   : > { %1149 = vmatmul.mubr.bf16.gmra.mrb[12].mxu0 %v3481_v15 }
 0x2a0   : > { %v830_v0 = vsel %vm824_vm2, %v828_v47, %v829_v45  ;;  %v1378_v47 = vld [vmem:[#allocation2 + $0x18] sm:$0xf0] }
 0x2a1   : > { %v676_v31 = vpop.permute.xlu1 %675  ;;  %979 = vmatprep.mubr.bf16.mxu1 %v830_v0  ;;  %2499 = vmatpush3.bf16.msra.mxu0 %v2736_v33 }
 0x2a2   : > { %980 = vmatmul.mubr.bf16.vlgmr.msra.gmra.mrb[0].mxu1 %v827_v32  ;;  %2500 = vmatprep.subr.bf16.mxu0 %v2739_v38 }
 0x2a3   : > { %2451 = vmatpush3.bf16.msra.mxu1 %v2730_v60  ;;  %v3511_v24 = vld [vmem:[#allocation2 + $0x20] sm:$0xff] }
 0x2a4   : > { %2452 = vmatprep.subr.bf16.mxu1 %v2733_v43  ;;  %v831_v50 = vrot.slane %v3511_v24, 4 }
 0x2a5   : > { %v678_v2 = vpop.permute.xlu1 %677  ;;  %2501 = vmatpush3.bf16.msra.mxu0 %v2740_v39 }
 0x2a6   : > { %2502 = vmatprep.subr.bf16.mxu0 %v2743_v16  ;;  %v832_v23 = vsel %vm824_vm2, %v826_v55, %v831_v50  ;;  %v1433_v55 = vrot.slane %v1378_v47, 4  ;;  %v2768_v47 = vld [vmem:[#allocation7 + $0x228] sm:$0xff]  }
 0x2a7   : > { %2453 = vmatpush3.bf16.msra.mxu1 %v2734_v63 }
 0x2a8   : > { %2454 = vmatprep.subr.bf16.mxu1 %v2737_v8  ;;  %v542_v8 = vld [vmem:[#allocation2 + $0x50] sm:$0x3] }
 0x2a9   : > { %v639_v9 = vpop.permute.xlu1 %638  ;;  %2503 = vmatpush3.bf16.msra.mxu0 %v2744_v44 }
 0x2aa   : > { %656 = vst.msk [vmem:[#allocation2 + $0x28] sm:$0xff] %vm536_vm15, %v639_v9  ;;  %2504 = vmatprep.subr.bf16.mxu0 %v2747_v61  ;;  %v1377_v61 = vld [vmem:[#allocation2 + $0x10] sm:$0xf0] }
 0x2ab   : > { %689 = vst.msk [vmem:[#allocation2 + $0x28] sm:$0xff] %vm570_vm12, %v676_v31  ;;  %2455 = vmatpush3.bf16.msra.mxu1 %v2738_v27 }
 0x2ac   : > { %2456 = vmatprep.subr.bf16.mxu1 %v2741_v7 }
 0x2ad   : > { %v643_v10 = vpop.permute.xlu1 %642  ;;  %2505 = vmatpush3.bf16.msra.mxu0 %v2748_v20  ;;  %v1430_v20 = vrot.slane %v1377_v61, 4 }
 0x2ae   : > { %v661_v11 = vsel %vm659_vm4, %v643_v10, %v660_v53  ;;  %2588 = vmatprep.subr.bf16.mxu0 %v3502_v49 }
 0x2af   : > { %662 = vst [vmem:[#allocation2 + $0x48] sm:$0xff] %v661_v11  ;;  %2457 = vmatpush3.bf16.msra.mxu1 %v2742_v54  ;;  %v2766_v54 = vld [vmem:[#allocation8 + $0x8] sm:$0xff]  }
 0x2b0   : > { %692 = vst.msk [vmem:[#allocation2 + $0x48] sm:$0x7f] %vm691_vm7, %v680_v56  ;;  %2458 = vmatprep.subr.bf16.mxu1 %v2745_v1  ;;  %v1432_v1 = vsel %vm824_vm2, %v1430_v20, %v831_v50 }
 0x2b1   : > { %v714_v37 = vpop.permute.xlu1 %713 }
 0x2b2   : > { %730 = vst.msk [vmem:[#allocation2 + $0x28] sm:$0xff] %vm603_vm14, %v714_v37 }
 0x2b3   : > { %2459 = vmatpush3.bf16.msra.mxu1 %v2746_v12 }
 0x2b4   : > { %2460 = vmatprep.subr.bf16.mxu1 %v2749_v13 }
 0x2b5   : > { %v641_v18 = vpop.permute.xlu1 %640 }
 0x2b6   : > { %657 = vst.msk [vmem:[#allocation2 + $0x38] sm:$0xff] %vm536_vm15, %v641_v18  ;;  %v2757_v18 = vld [vmem:[#allocation7 + $0x248] sm:$0xff]  }
 0x2b7   : > { %v734_v28 = vld [vmem:[#allocation2 + $0x48] sm:$0x7f]  ;;  %690 = vst.msk [vmem:[#allocation2 + $0x38] sm:$0xff] %vm570_vm12, %v678_v2  ;;  %2461 = vmatpush3.bf16.msra.mxu1 %v2750_v22  ;;  %v2756_v22 = vld [vmem:[#allocation7 + $0x200] sm:$0xff]  }
 0x2b8   : > { %v735_v35 = vsel %vm733_vm1, %v718_v25, %v734_v28  ;;  %2462 = vmatprep.subr.bf16.mxu1 %v2751_v17  ;;  %v1386_v25 = vld [vmem:[#allocation2 + $0x58] sm:$0xf] }
 0x2b9   : > { %736 = vst [vmem:[#allocation2 + $0x48] sm:$0x7f] %v735_v35  ;;  %v520_v21 = vpop.permute.xlu1 %519  ;;  %v3514_v40 = vld [vmem:[#allocation2 + $0x28] sm:$0xff]  ;;  %v2760_v35 = vld [vmem:[#allocation7 + $0x250] sm:$0xff]  }
 0x2ba   : > { %538 = vst.msk [vmem:[#allocation2 + $0x30] sm:$0xff] %vm536_vm15, %v520_v21  ;;  %v833_v48 = vrot.slane %v3514_v40, 4  ;;  %1156 = vmatprep.mubr.bf16.mxu0 %v3514_v40 }
 0x2bb   : > { %572 = vst.msk [vmem:[#allocation2 + $0x30] sm:$0xff] %vm570_vm12, %v558_v36  ;;  %1157 = vmatmul.mubr.bf16.gmra.mrb[16].mxu0 %v3511_v24  ;;  %2463 = vmatpush3.bf16.msra.mxu1 %v2752_v29  ;;  %v1446_v29 = vrot.slane %v1386_v25, 4 }
 0x2bc   : > { %611 = vst.msk [vmem:[#allocation2 + $0x30] sm:$0xff] %vm603_vm14, %v593_v14  ;;  %v834_v6 = vsel %vm824_vm2, %v829_v45, %v833_v48  ;;  %2464 = vmatprep.subr.bf16.mxu1 %v2753_v42  ;;  %v595_v45 = vpop.permute.xlu0 %594  ;;  %v1435_v39 = vsel %vm824_vm2, %v1433_v55, %v833_v48 }
 0x2bd   : > { %v716_v56 = vpop.permute.xlu1 %715  ;;  %987 = vmatprep.mubr.bf16.mxu1 %v834_v6  ;;  %v2763_v6 = vld [vmem:[#allocation7 + $0x218] sm:$0xff]  }
 0x2be   : > { %731 = vst.msk [vmem:[#allocation2 + $0x38] sm:$0xff] %vm603_vm14, %v716_v56  ;;  %988 = vmatmul.mubr.bf16.gmra.mrb[4].mxu1 %v832_v23  ;;  %v2765_v23 = vld [vmem:[#allocation7 + $0x220] sm:$0xff]  }
 0x2bf   : > { %2465 = vmatpush3.bf16.msra.mxu1 %v2754_v52 }
 0x2c0   : > { %2530 = vmatprep.subr.bf16.mxu1 %v2755_v57  ;;  %v780_v31 = vld [vmem:[#allocation2 + $0x48] sm:$0xf]  ;;  %v562_v9 = vpop.permute.xlu0 %561  ;;  %v2764_v57 = vld [vmem:[#allocation7 + $0x260] sm:$0xff]  }
 0x2c1   : > { %v522_v33 = vpop.permute.xlu1 %521  ;;  %v841_v63 = vrot.slane %v780_v31, 4  ;;  %v3554_v11 = vld [vmem:[#allocation2 + $0x48] sm:$0xff] }
 0x2c2   : > { %539 = vst.msk [vmem:[#allocation2 + $0x40] sm:$0xff] %vm536_vm15, %v522_v33  ;;  %vm541_vm15 = vmand %vm540_vm9, %vm479_vm10  ;;  %vm613_vm10 = vcmask 1041152   ;;  %v1442_v14 = vrot.slane %v3554_v11, 4  ;;  %v2767_v33 = vld [vmem:[#allocation7 + $0x268] sm:$0xff]  }
 0x2c3   : > { %v3531_v38 = vld [vmem:[#allocation2 + $0x30] sm:$0xff]  ;;  %vm614_vm8 = vmand %vm613_vm10, %vm3728_vm5 }
 0x2c4   : > { %v3536_v43 = vrot.slane %v3531_v38, 4  ;;  %v1447_v21 = vsel %vm824_vm2, %v1442_v14, %v1446_v29 }
 0x2c5   : > { %v560_v60 = vpop.permute.xlu1 %559  ;;  %v3533_v0 = vld [vmem:[#allocation2 + $0x38] sm:$0xff] }
 0x2c6   : > { %573 = vst.msk [vmem:[#allocation2 + $0x40] sm:$0xff] %vm570_vm12, %v560_v60  ;;  %v837_v32 = vrot.slane %v3533_v0, 4  ;;  %1164 = vmatprep.mubr.bf16.mxu0 %v3533_v0  ;;  %v836_v44 = vsel %vm824_vm2, %v831_v50, %v3536_v43  ;;  %v2761_v50 = vld [vmem:[#allocation7 + $0x210] sm:$0xff]   ;;  %vm3730_vm12 = vmmov %vm3729_vm11 }
 0x2c7   : > { %612 = vst.msk [vmem:[#allocation2 + $0x40] sm:$0xff] %vm603_vm14, %v595_v45  ;;  %1165 = vmatmul.mubr.bf16.gmra.mrb[20].mxu0 %v3531_v38  ;;  %v2769_v45 = vld [vmem:[#allocation7 + $0x270] sm:$0xff]   ;;  %vm3732_vm14 = vmmov %vm3729_vm11 }
 0x2c8   : > { %1584 = vmatprep.mubr.bf16.mxu0 %v1435_v39  ;;  %v838_v16 = vsel %vm824_vm2, %v833_v48, %v837_v32  ;;  %v842_v7 = vsel %vm824_vm2, %v837_v32, %v841_v63  ;;  %v2770_v60 = vld [vmem:[#allocation7 + $0x230] sm:$0xff]  }
 0x2c9   : > { %v524_v2 = vpop.permute.xlu1 %523  ;;  %995 = vmatprep.mubr.bf16.mxu1 %v838_v16 }
 0x2ca   : > { %v543_v27 = vsel %vm541_vm15, %v524_v2, %v542_v8  ;;  %996 = vmatmul.mubr.bf16.gmra.mrb[8].mxu1 %v836_v44 }
 0x2cb   : > { %544 = vst [vmem:[#allocation2 + $0x50] sm:$0x3] %v543_v27  ;;  %1003 = vmatprep.mubr.bf16.mxu1 %v842_v7 }
 0x2cc   : > { %575 = vst.msk [vmem:[#allocation2 + $0x50] sm:$0x1] %vm574_vm3, %v562_v9 }
 0x2cd   : > { %v597_v12 = vpop.permute.xlu1 %596 }
 0x2ce   : > { %v779_v36 = vld [vmem:[#allocation2 + $0x40] sm:$0xf] }
 0x2cf   : > { %1585 = vmatmul.mubr.bf16.vlgmr.msra.gmra.mrb[24].mxu0 %v1432_v1  ;;  %v839_v53 = vrot.slane %v779_v36, 4  ;;  %v1383_v17 = vld [vmem:[#allocation2 + $0x40] sm:$0xff] }
 0x2d0   : > { %1592 = vmatprep.mubr.bf16.mxu0 %v838_v16  ;;  %2589 = vmatpush3.bf16.msra.mxu0 %v3502_v49  ;;  %v1443_v49 = vsel %vm824_vm2, %v837_v32, %v1442_v14  ;;  %v1440_v28 = vrot.slane %v1383_v17, 4 }
 0x2d1   : > { %v840_v10 = vsel %vm824_vm2, %v3536_v43, %v839_v53  ;;  %2590 = vmatprep.subr.bf16.mxu0 %v2766_v54 }
 0x2d2   : > { %1004 = vmatmul.mubr.bf16.gmra.mrb[12].mxu1 %v840_v10  ;;  %v1441_v42 = vsel %vm824_vm2, %v3536_v43, %v1440_v28 }
 0x2d3   : > { %v615_v13 = vld [vmem:[#allocation2 + $0x50] sm:$0x1]  ;;  %1336 = vmatprep.mubr.bf16.mxu1 %v3489_v59  ;;  %v2759_v59 = vld [vmem:[#allocation7 + $0x208] sm:$0xff]  }
 0x2d4   : > { %v616_v37 = vsel %vm614_vm8, %v597_v12, %v615_v13  ;;  %2591 = vmatpush3.bf16.msra.mxu0 %v2766_v54 }
 0x2d5   : > { %617 = vst [vmem:[#allocation2 + $0x50] sm:$0x1] %v616_v37 }
 0x2d7   : > { %1593 = vmatmul.mubr.bf16.gmra.mrb[28].mxu0 %v836_v44 }
 0x2d8   : > { %1600 = vmatprep.mubr.bf16.mxu0 %v1443_v49 }
 0x2da   : > { %1337 = vmatmul.mubr.bf16.vlgmr.msra.gmra.mrb[16].mxu1 %v3481_v15  ;;  %v2762_v15 = vld [vmem:[#allocation7 + $0x258] sm:$0xff]  }
 0x2db   : > { %2531 = vmatpush3.bf16.msra.mxu1 %v2756_v22  ;;  %1344 = vmatprep.mubr.bf16.mxu1 %v3514_v40 }
 0x2dc   : > { %2532 = vmatprep.subr.bf16.mxu1 %v2757_v18  ;;  %v1385_v48 = vld [vmem:[#allocation2 + $0x50] sm:$0xf] }
 0x2dd   : > { %v1444_v52 = vrot.slane %v1385_v48, 4  ;;  %v1625_v34 = vld [vmem:[#allocation2 + $0x50] sm:$0xff] }
 0x2df   : > { %2533 = vmatpush3.bf16.msra.mxu1 %v2759_v59  ;;  %1601 = vmatmul.mubr.bf16.gmra.mrb[32].mxu0 %v1441_v42  ;;  %v1445_v56 = vsel %vm824_vm2, %v1440_v28, %v1444_v52 }
 0x2e0   : > { %1608 = vmatprep.mubr.bf16.mxu0 %v1447_v21  ;;  %2534 = vmatprep.subr.bf16.mxu1 %v2760_v35 }
 0x2e2   : > { %1345 = vmatmul.mubr.bf16.gmra.mrb[20].mxu1 %v3511_v24 }
 0x2e3   : > { %2535 = vmatpush3.bf16.msra.mxu1 %v2761_v50  ;;  %1352 = vmatprep.mubr.bf16.mxu1 %v3533_v0 }
 0x2e4   : > { %2536 = vmatprep.subr.bf16.mxu1 %v2762_v15 }
 0x2e7   : > { %2537 = vmatpush3.bf16.msra.mxu1 %v2763_v6  ;;  %1609 = vmatmul.mubr.bf16.gmra.mrb[36].mxu0 %v1445_v56 }
 0x2e8   : > { %2592 = vmatprep.mubr.msk.bf16.mxu0 %vm3729_vm11, %v1903_v30  ;;  %2538 = vmatprep.subr.bf16.mxu1 %v2764_v57  ;;  %v2789_v30 = vld [vmem:[#allocation2] sm:$0xff] }
 0x2ea   : > { %1353 = vmatmul.mubr.bf16.gmra.mrb[24].mxu1 %v3531_v38 }
 0x2eb   : > { %2539 = vmatpush3.bf16.msra.mxu1 %v2765_v23  ;;  %1360 = vmatprep.mubr.bf16.mxu1 %v3554_v11 }
 0x2ec   : > { %2540 = vmatprep.subr.bf16.mxu1 %v2767_v33 }
 0x2ef   : > { %2541 = vmatpush3.bf16.msra.mxu1 %v2768_v47  ;;  %2593 = vmatmul.mubr.msk.bf16.vlgmr.msra.gmra.mrb[40].mxu0 %vm3730_vm12, %v1904_v46 }
 0x2f0   : > { %2596 = vmatprep.mubr.msk.bf16.mxu0 %vm3731_vm13, %v1905_v62  ;;  %2542 = vmatprep.subr.bf16.mxu1 %v2769_v45 }
 0x2f2   : > { %1361 = vmatmul.mubr.bf16.gmra.mrb[28].mxu1 %v1383_v17 }
 0x2f3   : > { %2543 = vmatpush3.bf16.msra.mxu1 %v2770_v60  ;;  %1788 = vmatprep.mubr.bf16.mxu1 %v3514_v40 }
 0x2f4   : > { %2544 = vmatprep.subr.bf16.mxu1 %v2771_v19 }
 0x2f7   : > { %2545 = vmatpush3.bf16.msra.mxu1 %v2772_v26  ;;  %2597 = vmatmul.mubr.msk.bf16.gmra.mrb[44].mxu0 %vm3732_vm14, %v1906_v5 }
 0x2fa   : > { %1789 = vmatmul.mubr.bf16.vlgmr.msra.gmra.mrb[32].mxu1 %v3511_v24 }
 0x2fb   : > { %1796 = vmatprep.mubr.bf16.mxu1 %v3533_v0 }
 0x302   : > { %1797 = vmatmul.mubr.bf16.gmra.mrb[36].mxu1 %v3531_v38 }
 0x303   : > { %1804 = vmatprep.mubr.bf16.mxu1 %v3554_v11 }
 0x30a   : > { %1805 = vmatmul.mubr.bf16.gmra.mrb[40].mxu1 %v1383_v17 }
 0x30b   : > { %1812 = vmatprep.mubr.bf16.mxu1 %v2789_v30 }
 0x312   : > { %1813 = vmatmul.mubr.bf16.gmra.mrb[44].mxu1 %v1625_v34 }
 0x363   : > { %v2426_v41 = vpop.f32.mrb[8].mxu0 }
 0x364   : > { %v2427_v46 = vpop.f32.mrb[9].mxu0 }
 0x365   : > { %v2428_v51 = vadd.f32 %v2427_v46, %v2426_v41  ;;  %v2429_v58 = vpop.f32.mrb[10].mxu0 }
 0x366   : > { %v2430_v62 = vpop.f32.mrb[11].mxu0 }
 0x367   : > { %v2431_v3 = vadd.f32 %v2430_v62, %v2429_v58 }
 0x372   : > { %v2432_v4 = vpop.f32.mrb[12].mxu0 }
 0x373   : > { %v2433_v5 = vpop.f32.mrb[13].mxu0 }
 0x374   : > { %v2434_v24 = vadd.f32 %v2433_v5, %v2432_v4  ;;  %v2435_v40 = vpop.f32.mrb[14].mxu0 }
 0x375   : > { %v2386_v0 = vpop.f32.mrb[0].mxu1  ;;  %v2436_v43 = vpop.f32.mrb[15].mxu0 }
 0x376   : > { %v2437_v38 = vadd.f32 %v2436_v43, %v2435_v40  ;;  %v2387_v55 = vpop.f32.mrb[1].mxu1 }
 0x377   : > { %v2388_v31 = vadd.f32 %v2387_v55, %v2386_v0  ;;  %v2389_v32 = vpop.f32.mrb[2].mxu1 }
 0x378   : > { %v2390_v39 = vpop.f32.mrb[3].mxu1 }
 0x379   : > { %v1143_v16 = vadd.f32 %v2428_v51, %v2388_v31  ;;  %v2391_v63 = vadd.f32 %v2390_v39, %v2389_v32 }
 0x37b   : > { %v1146_v8 = vadd.f32 %v2431_v3, %v2391_v63 }
 0x38e   : > { %v2438_v2 = vpop.f32.mrb[16].mxu0 }
 0x38f   : > { %v2439_v44 = vpop.f32.mrb[17].mxu0 }
 0x390   : > { %v2440_v61 = vadd.f32 %v2439_v44, %v2438_v2  ;;  %v2441_v27 = vpop.f32.mrb[18].mxu0 }
 0x391   : > { %v2392_v7 = vpop.f32.mrb[4].mxu1  ;;  %v2442_v9 = vpop.f32.mrb[19].mxu0 }
 0x392   : > { %v2443_v20 = vadd.f32 %v2442_v9, %v2441_v27  ;;  %v2393_v54 = vpop.f32.mrb[5].mxu1 }
 0x393   : > { %v2394_v1 = vadd.f32 %v2393_v54, %v2392_v7  ;;  %v2395_v36 = vpop.f32.mrb[6].mxu1 }
 0x394   : > { %v2396_v53 = vpop.f32.mrb[7].mxu1 }
 0x395   : > { %v1151_v10 = vadd.f32 %v2434_v24, %v2394_v1  ;;  %v2397_v11 = vadd.f32 %v2396_v53, %v2395_v36 }
 0x397   : > { %v1154_v12 = vadd.f32 %v2437_v38, %v2397_v11 }
 0x39a   : > { %v2444_v13 = vpop.f32.mrb[20].mxu0 }
 0x39b   : > { %v2445_v37 = vpop.f32.mrb[21].mxu0 }
 0x39c   : > { %v2446_v14 = vadd.f32 %v2445_v37, %v2444_v13  ;;  %v2447_v49 = vpop.f32.mrb[22].mxu0 }
 0x39d   : > { %v2398_v22 = vpop.f32.mrb[8].mxu1  ;;  %v2448_v17 = vpop.f32.mrb[23].mxu0 }
 0x39e   : > { %v2449_v18 = vadd.f32 %v2448_v17, %v2447_v49  ;;  %v2399_v25 = vpop.f32.mrb[9].mxu1 }
 0x39f   : > { %v2400_v28 = vadd.f32 %v2399_v25, %v2398_v22  ;;  %v2401_v59 = vpop.f32.mrb[10].mxu1 }
 0x3a0   : > { %v2402_v29 = vpop.f32.mrb[11].mxu1 }
 0x3a1   : > { %v1159_v35 = vadd.f32 %v2440_v61, %v2400_v28  ;;  %v2403_v42 = vadd.f32 %v2402_v29, %v2401_v59 }
 0x3a2   : > { %v2506_v21 = vpop.f32.mrb[24].mxu0 }
 0x3a3   : > { %v1162_v50 = vadd.f32 %v2443_v20, %v2403_v42  ;;  %v2507_v48 = vpop.f32.mrb[25].mxu0 }
 0x3a4   : > { %v2508_v15 = vadd.f32 %v2507_v48, %v2506_v21  ;;  %v2509_v52 = vpop.f32.mrb[26].mxu0 }
 0x3a5   : > { %v2404_v6 = vpop.f32.mrb[12].mxu1  ;;  %v2510_v57 = vpop.f32.mrb[27].mxu0 }
 0x3a6   : > { %v2511_v56 = vadd.f32 %v2510_v57, %v2509_v52  ;;  %v2405_v23 = vpop.f32.mrb[13].mxu1 }
 0x3a7   : > { %v2406_v33 = vadd.f32 %v2405_v23, %v2404_v6  ;;  %v2407_v47 = vpop.f32.mrb[14].mxu1 }
 0x3a8   : > { %v2408_v45 = vpop.f32.mrb[15].mxu1 }
 0x3a9   : > { %v1167_v60 = vadd.f32 %v2446_v14, %v2406_v33  ;;  %v2409_v19 = vadd.f32 %v2408_v45, %v2407_v47 }
 0x3aa   : > { %v2512_v26 = vpop.f32.mrb[28].mxu0 }
 0x3ab   : > { %v1170_v30 = vadd.f32 %v2449_v18, %v2409_v19  ;;  %v2513_v34 = vpop.f32.mrb[29].mxu0 }
 0x3ac   : > { %v2514_v41 = vadd.f32 %v2513_v34, %v2512_v26  ;;  %v2515_v46 = vpop.f32.mrb[30].mxu0 }
 0x3ad   : > { %v2466_v51 = vpop.f32.mrb[16].mxu1  ;;  %v2516_v58 = vpop.f32.mrb[31].mxu0 }
 0x3ae   : > { %v2517_v62 = vadd.f32 %v2516_v58, %v2515_v46  ;;  %v2467_v3 = vpop.f32.mrb[17].mxu1 }
 0x3af   : > { %v2468_v4 = vadd.f32 %v2467_v3, %v2466_v51  ;;  %v2469_v5 = vpop.f32.mrb[18].mxu1 }
 0x3b0   : > { %v2470_v24 = vpop.f32.mrb[19].mxu1 }
 0x3b1   : > { %v1369_v40 = vadd.f32 %v2468_v4, %v1143_v16  ;;  %v2471_v0 = vadd.f32 %v2470_v24, %v2469_v5 }
 0x3b2   : > { %v2518_v43 = vpop.f32.mrb[32].mxu0 }
 0x3b3   : > { %v1370_v38 = vadd.f32 %v2471_v0, %v1146_v8  ;;  %v2519_v55 = vpop.f32.mrb[33].mxu0  ;;  %v1617_v31 = vadd.f32 %v2508_v15, %v1369_v40 }
 0x3b4   : > { %v2520_v32 = vadd.f32 %v2519_v55, %v2518_v43  ;;  %v2521_v39 = vpop.f32.mrb[34].mxu0 }
 0x3b5   : > { %v2472_v63 = vpop.f32.mrb[20].mxu1  ;;  %v2522_v2 = vpop.f32.mrb[35].mxu0  ;;  %v1618_v44 = vadd.f32 %v2511_v56, %v1370_v38 }
 0x3b6   : > { %v2523_v61 = vadd.f32 %v2522_v2, %v2521_v39  ;;  %v2473_v27 = vpop.f32.mrb[21].mxu1 }
 0x3b7   : > { %v2474_v7 = vadd.f32 %v2473_v27, %v2472_v63  ;;  %v2475_v9 = vpop.f32.mrb[22].mxu1 }
 0x3b8   : > { %v2476_v20 = vpop.f32.mrb[23].mxu1 }
 0x3b9   : > { %v1371_v54 = vadd.f32 %v2474_v7, %v1151_v10  ;;  %v2477_v1 = vadd.f32 %v2476_v20, %v2475_v9 }
 0x3ba   : > { %v2524_v36 = vpop.f32.mrb[36].mxu0 }
 0x3bb   : > { %v1372_v53 = vadd.f32 %v2477_v1, %v1154_v12  ;;  %v2525_v16 = vpop.f32.mrb[37].mxu0  ;;  %v1619_v11 = vadd.f32 %v2514_v41, %v1371_v54 }
 0x3bc   : > { %v2526_v13 = vadd.f32 %v2525_v16, %v2524_v36  ;;  %v2527_v8 = vpop.f32.mrb[38].mxu0 }
 0x3bd   : > { %v2478_v37 = vpop.f32.mrb[24].mxu1  ;;  %v2528_v14 = vpop.f32.mrb[39].mxu0  ;;  %v1620_v49 = vadd.f32 %v2517_v62, %v1372_v53 }
 0x3be   : > { %v2529_v22 = vadd.f32 %v2528_v14, %v2527_v8  ;;  %v2479_v17 = vpop.f32.mrb[25].mxu1 }
 0x3bf   : > { %v2480_v18 = vadd.f32 %v2479_v17, %v2478_v37  ;;  %v2481_v25 = vpop.f32.mrb[26].mxu1 }
 0x3c0   : > { %v2482_v28 = vpop.f32.mrb[27].mxu1 }
 0x3c1   : > { %v1373_v59 = vadd.f32 %v2480_v18, %v1159_v35  ;;  %v2483_v29 = vadd.f32 %v2482_v28, %v2481_v25 }
 0x3c2   : > { %v2594_v42 = vpop.f32.mrb[40].mxu0 }
 0x3c3   : > { %v1374_v21 = vadd.f32 %v2483_v29, %v1162_v50  ;;  %v1969_v10 = vpop.f32.mrb[41].mxu0  ;;  %v1621_v48 = vadd.f32 %v2520_v32, %v1373_v59 }
 0x3c4   : > { %v2595_v15 = vpop.f32.mrb[42].mxu0 }
 0x3c5   : > { %v2484_v12 = vpop.f32.mrb[28].mxu1  ;;  %v1972_v52 = vpop.f32.mrb[43].mxu0  ;;  %v1622_v6 = vadd.f32 %v2523_v61, %v1374_v21 }
 0x3c6   : > { %v2485_v57 = vpop.f32.mrb[29].mxu1 }
 0x3c7   : > { %v2486_v56 = vadd.f32 %v2485_v57, %v2484_v12  ;;  %v2487_v23 = vpop.f32.mrb[30].mxu1 }
 0x3c8   : > { %v2488_v33 = vpop.f32.mrb[31].mxu1 }
 0x3c9   : > { %v1375_v47 = vadd.f32 %v2486_v56, %v1167_v60  ;;  %v2489_v45 = vadd.f32 %v2488_v33, %v2487_v23  ;;  %v3598_v60 = vld [vmem:[#allocation10] ss:$0 sm:$0xff] }
 0x3ca   : > { %v3590_v19 = vpop.f32.mrb[44].mxu0 }
 0x3cb   : > { %v1376_v26 = vadd.f32 %v2489_v45, %v1170_v30  ;;  %v1985_v34 = vpop.f32.mrb[45].mxu0  ;;  %v3592_v35 = vadd.f32 %v2526_v13, %v1375_v47 }
 0x3cc   : > { %v3594_v41 = vpop.f32.mrb[46].mxu0 }
 0x3cd   : > { %v2546_v50 = vpop.f32.mrb[32].mxu1  ;;  %v1988_v46 = vpop.f32.mrb[47].mxu0  ;;  %v3596_v51 = vadd.f32 %v2529_v22, %v1376_v26 }
 0x3ce   : > { %v2547_v58 = vpop.f32.mrb[33].mxu1 }
 0x3cf   : > { %v2548_v62 = vadd.f32 %v2547_v58, %v2546_v50  ;;  %v2549_v3 = vpop.f32.mrb[34].mxu1 }
 0x3d0   : > { %v2550_v4 = vpop.f32.mrb[35].mxu1 }
 0x3d1   : > { %v1821_v5 = vadd.f32 %v2548_v62, %v1617_v31  ;;  %v2551_v24 = vadd.f32 %v2550_v4, %v2549_v3 }
 0x3d3   : > { %v2000_v40 = vadd.f32 %v1969_v10, %v1821_v5  ;;  %v1822_v0 = vadd.f32 %v2551_v24, %v1618_v44 }
 0x3d5   : > { %v3601_v30 = vadd.f32 %v3598_v60, %v2000_v40  ;;  %v2001_v43 = vadd.f32 %v1972_v52, %v1822_v0  ;;  %v2552_v38 = vpop.f32.mrb[36].mxu1 }
 0x3d6   : > { %v2553_v55 = vpop.f32.mrb[37].mxu1 }
 0x3d7   : > { %v3604_v32 = vadd.f32 %v3598_v60, %v2001_v43  ;;  %v2554_v39 = vadd.f32 %v2553_v55, %v2552_v38  ;;  %v2555_v63 = vpop.f32.mrb[38].mxu1  ;;  %v2031_v2 = vmul.f32 0.044715, %v3601_v30  ;;  %v2023_v55 = vmul.f32 0.5, %v3601_v30 }
 0x3d8   : > { %v2556_v61 = vpop.f32.mrb[39].mxu1 }
 0x3d9   : > { %v2032_v31 = vmul.f32 0.044715, %v3604_v32  ;;  %v1823_v27 = vadd.f32 %v2554_v39, %v1619_v11  ;;  %v2557_v7 = vadd.f32 %v2556_v61, %v2555_v63  ;;  %v2039_v44 = vmul.f32 %v2031_v2, %v3601_v30 }
 0x3db   : > { %v2002_v9 = vadd.f32 %v2594_v42, %v1823_v27  ;;  %v1824_v20 = vadd.f32 %v2557_v7, %v1620_v49  ;;  %v2047_v54 = vmul.f32 %v2039_v44, %v3601_v30  ;;  %v2040_v1 = vmul.f32 %v2032_v31, %v3604_v32 }
 0x3dd   : > { %v3612_v36 = vadd.f32 %v3598_v60, %v2002_v9  ;;  %v2003_v53 = vadd.f32 %v2595_v15, %v1824_v20  ;;  %v2558_v16 = vpop.f32.mrb[40].mxu1  ;;  %v2055_v13 = vadd.f32 %v2047_v54, %v3601_v30  ;;  %v2048_v8 = vmul.f32 %v2040_v1, %v3604_v32 }
 0x3de   : > { %v2559_v37 = vpop.f32.mrb[41].mxu1  ;;  %v2024_v30 = vmul.f32 0.5, %v3604_v32 }
 0x3df   : > { %v2033_v11 = vmul.f32 0.044715, %v3612_v36  ;;  %v3618_v14 = vadd.f32 %v3598_v60, %v2003_v53  ;;  %v2560_v49 = vadd.f32 %v2559_v37, %v2558_v16  ;;  %v2561_v22 = vpop.f32.mrb[42].mxu1  ;;  %v2063_v17 = vmul.f32 0.7978846, %v2055_v13 }
 0x3e0   : > { %v2562_v18 = vpop.f32.mrb[43].mxu1  ;;  %v2056_v25 = vadd.f32 %v2048_v8, %v3604_v32 }
 0x3e1   : > { %v2034_v28 = vmul.f32 0.044715, %v3618_v14  ;;  %v1825_v59 = vadd.f32 %v2560_v49, %v1621_v48  ;;  %v2563_v29 = vadd.f32 %v2562_v18, %v2561_v22  ;;  %2773 = vtanh.f32 %v2063_v17 }
 0x3e2   : > { %v2064_v42 = vmul.f32 0.7978846, %v2056_v25  ;;  %v2041_v21 = vmul.f32 %v2033_v11, %v3612_v36 }
 0x3e3   : > { %v2004_v10 = vadd.f32 %v1985_v34, %v1825_v59  ;;  %v1826_v15 = vadd.f32 %v2563_v29, %v1622_v6  ;;  %v2042_v12 = vmul.f32 %v2034_v28, %v3618_v14  ;;  %v2026_v28 = vmul.f32 0.5, %v3618_v14 }
 0x3e4   : > { %2775 = vtanh.f32 %v2064_v42  ;;  %v2049_v52 = vmul.f32 %v2041_v21, %v3612_v36 }
 0x3e5   : > { %v3626_v57 = vadd.f32 %v3598_v60, %v2004_v10  ;;  %v2005_v56 = vadd.f32 %v1988_v46, %v1826_v15  ;;  %v2564_v23 = vpop.f32.mrb[44].mxu1  ;;  %v2050_v33 = vmul.f32 %v2042_v12, %v3618_v14 }
 0x3e6   : > { %v2565_v48 = vpop.f32.mrb[45].mxu1  ;;  %v2057_v47 = vadd.f32 %v2049_v52, %v3612_v36 }
 0x3e7   : > { %v2035_v45 = vmul.f32 0.044715, %v3626_v57  ;;  %v3632_v26 = vadd.f32 %v3598_v60, %v2005_v56  ;;  %v2566_v6 = vadd.f32 %v2565_v48, %v2564_v23  ;;  %v2567_v34 = vpop.f32.mrb[46].mxu1  ;;  %v2058_v50 = vadd.f32 %v2050_v33, %v3618_v14 }
 0x3e8   : > { %v2568_v58 = vpop.f32.mrb[47].mxu1  ;;  %v2065_v62 = vmul.f32 0.7978846, %v2057_v47  ;;  %v2027_v10 = vmul.f32 0.5, %v3626_v57 }
 0x3e9   : > { %v2036_v3 = vmul.f32 0.044715, %v3632_v26  ;;  %v1827_v46 = vadd.f32 %v2566_v6, %v3592_v35  ;;  %v2569_v4 = vadd.f32 %v2568_v58, %v2567_v34  ;;  %v2066_v5 = vmul.f32 0.7978846, %v2058_v50 }
 0x3ea   : > { %2777 = vtanh.f32 %v2065_v62  ;;  %v2043_v24 = vmul.f32 %v2035_v45, %v3626_v57  ;;  %v2028_v52 = vmul.f32 0.5, %v3632_v26 }
 0x3eb   : > { %v2774_v40 = vpop.eup %2773  ;;  %v2006_v0 = vadd.f32 %v3590_v19, %v1827_v46  ;;  %v1828_v43 = vadd.f32 %v2569_v4, %v3596_v51  ;;  %2779 = vtanh.f32 %v2066_v5  ;;  %v2044_v38 = vmul.f32 %v2036_v3, %v3632_v26 }
 0x3ec   : > { %v2079_v39 = vadd.f32 1.0, %v2774_v40  ;;  %v2051_v63 = vmul.f32 %v2043_v24, %v3626_v57 }
 0x3ed   : > { %v2021_v35 = vadd.f32 %v3598_v60, %v2006_v0  ;;  %v2007_v2 = vadd.f32 %v3594_v41, %v1828_v43  ;;  %v2052_v61 = vmul.f32 %v2044_v38, %v3632_v26 }
 0x3ee   : > { %v2776_v31 = vpop.eup %2775  ;;  %v2087_v27 = vmul.f32 %v2079_v39, %v2023_v55  ;;  %v2059_v19 = vadd.f32 %v2051_v63, %v3626_v57 }
 0x3ef   : > { %v2037_v7 = vmul.f32 0.044715, %v2021_v35  ;;  %v2022_v51 = vadd.f32 %v3598_v60, %v2007_v2  ;;  %v2080_v44 = vadd.f32 1.0, %v2776_v31  ;;  %v2060_v9 = vadd.f32 %v2052_v61, %v3632_v26 }
 0x3f0   : > { %2095 = vxpose.xlu0.b32.start [1/8] (short) %v2087_v27, 128  ;;  %v2067_v20 = vmul.f32 0.7978846, %v2059_v19  ;;  %v2025_v60 = vmul.f32 0.5, %v3612_v36  ;;  %v2029_v14 = vmul.f32 0.5, %v2021_v35 }
 0x3f1   : > { %v2038_v54 = vmul.f32 0.044715, %v2022_v51  ;;  %v2068_v1 = vmul.f32 0.7978846, %v2060_v9  ;;  %v2045_v53 = vmul.f32 %v2037_v7, %v2021_v35  ;;  %v2088_v41 = vmul.f32 %v2080_v44, %v2024_v30 }
 0x3f2   : > { %2781 = vtanh.f32 %v2067_v20  ;;  %v2030_v6 = vmul.f32 0.5, %v2022_v51 }
 0x3f3   : > { %2783 = vtanh.f32 %v2068_v1  ;;  %v2053_v16 = vmul.f32 %v2045_v53, %v2021_v35  ;;  %v2046_v13 = vmul.f32 %v2038_v54, %v2022_v51 }
 0x3f4   : > { %v2778_v8 = vpop.eup %2777  ;;  %2096 = vxpose.xlu0.b32.cont [2/8] (short) %v2088_v41, 128 }
 0x3f5   : > { %v2780_v37 = vpop.eup %2779  ;;  %v2081_v11 = vadd.f32 1.0, %v2778_v8  ;;  %v2061_v49 = vadd.f32 %v2053_v16, %v2021_v35  ;;  %v2054_v22 = vmul.f32 %v2046_v13, %v2022_v51 }
 0x3f6   : > { %v2082_v18 = vadd.f32 1.0, %v2780_v37 }
 0x3f7   : > { %v2089_v17 = vmul.f32 %v2081_v11, %v2025_v60  ;;  %v2069_v32 = vmul.f32 0.7978846, %v2061_v49  ;;  %v2062_v25 = vadd.f32 %v2054_v22, %v2022_v51 }
 0x3f8   : > { %v2090_v29 = vmul.f32 %v2082_v18, %v2026_v28 }
 0x3f9   : > { %2097 = vxpose.xlu0.b32.cont [3/8] (short) %v2089_v17, 128  ;;  %2785 = vtanh.f32 %v2069_v32  ;;  %v2070_v59 = vmul.f32 0.7978846, %v2062_v25 }
 0x3fb   : > { %2787 = vtanh.f32 %v2070_v59 }
 0x3fc   : > { %v2782_v42 = vpop.eup %2781 }
 0x3fd   : > { %v2784_v21 = vpop.eup %2783  ;;  %2098 = vxpose.xlu0.b32.cont [4/8] (short) %v2090_v29, 128  ;;  %v2083_v36 = vadd.f32 1.0, %v2782_v42 }
 0x3fe   : > { %v2084_v12 = vadd.f32 1.0, %v2784_v21 }
 0x3ff   : > { %v2091_v15 = vmul.f32 %v2083_v36, %v2027_v10 }
 0x400   : > { %v2092_v23 = vmul.f32 %v2084_v12, %v2028_v52 }
 0x401   : > { %2099 = vxpose.xlu0.b32.cont [5/8] (short) %v2091_v15, 128 }
 0x403   : > { %v2786_v56 = vpop.eup %2785 }
 0x404   : > { %v2085_v33 = vadd.f32 1.0, %v2786_v56 }
 0x405   : > { %v2788_v48 = vpop.eup %2787  ;;  %2100 = vxpose.xlu0.b32.cont [6/8] (short) %v2092_v23, 128 }
 0x406   : > { %v2093_v47 = vmul.f32 %v2085_v33, %v2029_v14  ;;  %v2086_v45 = vadd.f32 1.0, %v2788_v48 }
 0x408   : > { %v2094_v34 = vmul.f32 %v2086_v45, %v2030_v6 }
 0x409   : > { %2101 = vxpose.xlu0.b32.cont [7/8] (short) %v2093_v47, 128 }
 0x40d   : > { %2102 = vxpose.xlu0.b32.end [8/8] (short) %v2094_v34, 128 }
 0x471   : > { %v2111_v57 = vpop.trf.xlu0 }
 0x472   : > { %2128 = vst.msk [vmem:[%s3659_s6] sm:$0xff] %vm2127_vm0, %v2111_v57 }
 0x475   : > { %v2112_v26 = vpop.trf.xlu0 }
 0x476   : > { %2129 = vst.msk [vmem:[%s3659_s6 + $0x8] sm:$0xff] %vm2127_vm0, %v2112_v26 }
 0x479   : > { %v2113_v50 = vpop.trf.xlu0 }
 0x47a   : > { %2130 = vst.msk [vmem:[%s3659_s6 + $0x10] sm:$0xff] %vm2127_vm0, %v2113_v50 }
 0x47d   : > { %v2114_v58 = vpop.trf.xlu0 }
 0x47e   : > { %2131 = vst.msk [vmem:[%s3659_s6 + $0x18] sm:$0xff] %vm2127_vm0, %v2114_v58 }
 0x481   : > { %v2115_v62 = vpop.trf.xlu0 }
 0x482   : > { %2132 = vst.msk [vmem:[%s3659_s6 + $0x20] sm:$0xff] %vm2127_vm0, %v2115_v62 }
 0x485   : > { %v2116_v3 = vpop.trf.xlu0 }
 0x486   : > { %2133 = vst.msk [vmem:[%s3659_s6 + $0x28] sm:$0xff] %vm2127_vm0, %v2116_v3 }
 0x489   : > { %v2117_v46 = vpop.trf.xlu0 }
 0x48a   : > { %2134 = vst.msk [vmem:[%s3659_s6 + $0x30] sm:$0xff] %vm2127_vm0, %v2117_v46 }
 0x48d   : > { %v2118_v4 = vpop.trf.xlu0 }
 0x48e   : > { %2135 = vst.msk [vmem:[%s3659_s6 + $0x38] sm:$0xff] %vm2127_vm0, %v2118_v4 }
 0x491   : > { %v2119_v5 = vpop.trf.xlu0 }
 0x492   : > { %2136 = vst.msk [vmem:[%s3659_s6 + $0x40] sm:$0xff] %vm2127_vm0, %v2119_v5 }
 0x495   : > { %v2120_v24 = vpop.trf.xlu0 }
 0x496   : > { %2137 = vst.msk [vmem:[%s3659_s6 + $0x48] sm:$0xff] %vm2127_vm0, %v2120_v24 }
 0x499   : > { %v2121_v40 = vpop.trf.xlu0 }
 0x49a   : > { %2138 = vst.msk [vmem:[%s3659_s6 + $0x50] sm:$0xff] %vm2127_vm0, %v2121_v40 }
 0x49d   : > { %v2122_v0 = vpop.trf.xlu0 }
 0x49e   : > { %2139 = vst.msk [vmem:[%s3659_s6 + $0x58] sm:$0xff] %vm2127_vm0, %v2122_v0 }
 0x4a1   : > { %v2123_v43 = vpop.trf.xlu0 }
 0x4a2   : > { %2140 = vst.msk [vmem:[%s3659_s6 + $0x60] sm:$0xff] %vm2127_vm0, %v2123_v43 }
 0x4a5   : > { %v2124_v38 = vpop.trf.xlu0 }
 0x4a6   : > { %2141 = vst.msk [vmem:[%s3659_s6 + $0x68] sm:$0xff] %vm2127_vm0, %v2124_v38 }
 0x4a9   : > { %v2125_v55 = vpop.trf.xlu0 }
 0x4aa   : > { %2142 = vst.msk [vmem:[%s3659_s6 + $0x70] sm:$0xff] %vm2127_vm0, %v2125_v55 }
 0x4ad   : > { %v2126_v39 = vpop.trf.xlu0 }
 0x4ae   : > { %2143 = vst.msk [vmem:[%s3659_s6 + $0x78] sm:$0xff] %vm2127_vm0, %v2126_v39 }
 0x4af PF: > { %p17_p5 = scmp.ge.s32.totalorder %s3167_s12, 4   ;;  %s3733_s18 = smov %s2966_s19 }
 0x4b0   : > { %s3734_s19 = smov %s2970_s20  ;;  %s3735_s20 = smov %s3178_s29 }
 0x4b1   : > { %s3736_s21 = smov %s3167_s12  ;;  %19 = sbr.rel (!%p17_p5) target bundleno = 5 (0x5), region = 100 }
 0x4b8   :  { %2165 = vsyncpa [#allocation4], 1 }
 0x4b9   :  { %2167 = vsyncpa [#allocation4 + $0x1], 1 }
 0x4ba   :  { %2168 = vsyncpa [#allocation6], 1 }
 0x4bb   :  { %2169 = vsyncpa [#allocation9], 1 }

</bundles_post_ra>
